<compile_context>
chip_gen: v6e
topology: v6e:2x2x1
jax: 0.10.0
libtpu: 0.0.40
codegen_flags: <defaults>
</compile_context>

<pallas_src>
from functools import partial

import jax
import jax.numpy as jnp
from jax.experimental import pallas as pl
from jax.experimental.pallas import tpu as pltpu


# ----------------------------- Pallas kernel ------------------------------- #

def _shift_gather_kernel(shifts_ref, x_ref, o_ref, pad_buf_ref):
    # shifts_ref : SMEM (b, 2) int32 scalar-prefetch; [:,0]=x(col) shift, [:,1]=y(row)
    # x_ref      : VMEM (BN, TC, H, W) input block  (TC = t*c planes of one batch b)
    # o_ref      : VMEM (BN, TC, H, W) output block (same NCHW layout)
    # pad_buf_ref: VMEM (H + 2*pad, W) scratch: one plane with replicate-padded rows
    bn, tc, h, w = x_ref.shape
    pad = (pad_buf_ref.shape[0] - h) // 2
    base_b = pl.program_id(0) * bn

    # Hoisted iotas for the in-kernel one-hot column-gather matrix (built once).
    col_out = jax.lax.broadcasted_iota(jnp.int32, (w, w), 1)   # output column j
    col_src = jax.lax.broadcasted_iota(jnp.int32, (w, w), 0)   # source column

    for s in range(bn):                          # static unroll: images in this block
        b_idx = base_b + s
        sx = shifts_ref[b_idx, 0]                # column (width) shift in [0, 2*pad]
        sy = shifts_ref[b_idx, 1]                # row (height)   shift in [0, 2*pad]

        # One-hot (W, W): axt[w_src, j] = 1 iff w_src == clip(j + sx - pad, 0, W-1).
        # Built from the SMEM scalar -> no HBM traffic, no per-t duplication.
        src = jnp.clip(col_out + (sx - pad), 0, w - 1)
        axt = (col_src == src).astype(jnp.float32)

        for k in range(tc):                      # static unroll: (t*c) planes
            # Replicate-pad this plane's rows into the VMEM scratch (pad rows/side).
            pad_buf_ref[pad:pad + h, :] = x_ref[s, k, :, :]
            if pad > 0:
                pad_buf_ref[:pad, :] = jnp.broadcast_to(
                    x_ref[s, k, 0:1, :], (pad, w))
                pad_buf_ref[pad + h:, :] = jnp.broadcast_to(
                    x_ref[s, k, h - 1:h, :], (pad, w))
            # Clamped row gather == ONE dynamic-start sublane slice (exact, no MXU).
            rows = pad_buf_ref[pl.ds(sy, h), :]                      # (H, W)
            # Clamped column gather == one tiny one-hot matmul (hidden under DMA).
            o_ref[s, k, :, :] = jnp.dot(
                rows, axt, preferred_element_type=jnp.float32
            ).astype(o_ref.dtype)


# --------------------------- block-size heuristics -------------------------- #

def _num_tensorcores():
    """Best-effort TensorCore count of device 0 (grid>=2 only matters if >1)."""
    try:
        dev = jax.devices()[0]
        for attr in ("num_cores", "core_count"):
            v = getattr(dev, attr, None)
            if isinstance(v, int) and v > 0:
                return v
    except Exception:
        pass
    return 1


def _vmem_capacity_bytes():
    """Best-effort VMEM capacity; fall back to the v7x-safe 64 MiB."""
    try:
        v = int(pltpu.get_tpu_info().vmem_capacity_bytes)
        if v > 0:
            return v
    except Exception:
        pass
    return 64 << 20


def _pick_bn_and_vmem_limit(b, tc, h, w, pad, itemsize, max_unroll=16):
    """Images per grid step + an explicit scoped-VMEM limit.

    Accounts for Pallas double-buffering of the in/out blocks (x2 each) plus the
    scratch plane, keeps the in-flight footprint <= ~1/4 of physical VMEM (safe on
    v7x's 64 MiB, large on v5e/v6e's 128 MiB), and only enforces a >=2-step grid
    where more than one TensorCore can use the 'parallel' axis."""
    def rup(v, m):
        return ((v + m - 1) // m) * m

    io_block = tc * rup(h, 8) * rup(w, 128) * itemsize       # one image, lane-padded
    per_bn = 2 * 2 * io_block                                # (in + out) x double-buf
    scratch = rup(h + 2 * pad, 8) * rup(w, 128) * itemsize
    cap = _vmem_capacity_bytes()
    budget = max(4 << 20, min(32 << 20, cap // 4))

    bn = 1
    for cand in range(1, min(b, max_unroll) + 1):
        if b % cand == 0 and cand * per_bn + scratch <= budget:
            bn = cand
    # Keep >= 2 grid steps only where a second TensorCore can pick them up.
    if _num_tensorcores() > 1 and b >= 2 and b // bn < 2:
        for cand in range(bn, 0, -1):
            if b % cand == 0 and b // cand >= 2:
                bn = cand
                break

    footprint = bn * per_bn + scratch + (2 << 20)            # + slack for temporaries
    vmem_limit = int(min(cap, max(2 * footprint, 32 << 20)))
    return bn, vmem_limit


def _pallas_shift_gather(x4, shifts, pad):
    b, tc, h, w = x4.shape
    bn, vmem_limit = _pick_bn_and_vmem_limit(b, tc, h, w, pad, x4.dtype.itemsize)
    return pl.pallas_call(
        _shift_gather_kernel,
        out_shape=jax.ShapeDtypeStruct((b, tc, h, w), jnp.float32),
        grid_spec=pltpu.PrefetchScalarGridSpec(
            num_scalar_prefetch=1,
            grid=(b // bn,),
            in_specs=[pl.BlockSpec((bn, tc, h, w), lambda i, sref: (i, 0, 0, 0))],
            out_specs=pl.BlockSpec((bn, tc, h, w), lambda i, sref: (i, 0, 0, 0)),
            scratch_shapes=[pltpu.VMEM((h + 2 * pad, w), jnp.float32)],
        ),
        compiler_params=pltpu.CompilerParams(
            dimension_semantics=("parallel",),
            vmem_limit_bytes=vmem_limit,
        ),
    )(shifts, x4)


# ------------------------------ JAX glue ----------------------------------- #

def _draw_shifts(key, b, pad):
    # torch.randint(0, 2*pad+1, (b,1,1,1,2)): [...,0]=x shift, [...,1]=y shift,
    # drawn once per b and shared across t (and c).
    return jax.random.randint(key, (b, 2), 0, 2 * pad + 1, dtype=jnp.int32)


@partial(jax.jit, static_argnames=("pad",))
def random_shifts_aug(x, key, *, pad):
    x = x.astype(jnp.float32)
    b, t, c, h, w = x.shape
    assert h == w
    shifts = _draw_shifts(key, b, pad)
    x4 = x.reshape(b, t * c, h, w)              # contiguous NCHW: zero-cost view
    out = _pallas_shift_gather(x4, shifts, pad)
    return out.reshape(b, t, c, h, w)


# ------------------------------- main --------------------------------------- #

if __name__ == "__main__":
    pad = 4
    b, t, c, h, w = 2, 2, 4, 16, 16

    key = jax.random.PRNGKey(0)
    kx, kshift = jax.random.split(key)
    # Integer-valued pixels (like real uint8 frames): integers <= 255 are exact in
    # bf16, so the one-hot MXU matmul is bit-exact even at default precision and
    # the check below can be tight.
    x = jnp.round(jax.random.uniform(kx, (b, t, c, h, w), dtype=jnp.float32) * 255.0)

    out = jax.block_until_ready(random_shifts_aug(x, kshift, pad=pad))
    assert out.shape == (b, t, c, h, w)
    assert out.dtype == jnp.float32

    # Independent reference: the random shift is an exact integer number of pixels,
    # so replicate-pad + bilinear grid_sample reduces to a clamped integer gather.
    shifts = jax.device_get(_draw_shifts(kshift, b, pad))
    rows = jnp.arange(h)
    cols = jnp.arange(w)
    refs = []
    for bi in range(b):
        sx, sy = int(shifts[bi, 0]), int(shifts[bi, 1])
        r = jnp.clip(rows + sy - pad, 0, h - 1)
        cc = jnp.clip(cols + sx - pad, 0, w - 1)
        refs.append(x[bi][:, :, r, :][:, :, :, cc])
    ref = jnp.stack(refs, axis=0)
    assert jnp.allclose(out, ref, rtol=0.0, atol=1e-5), "mismatch vs reference"

    print("KERNEL_OK")
</pallas_src>

<mosaic_0001>
module attributes {stable_mosaic.version = 11 : i64} {
  func.func @_shift_gather_kernel(%arg0: i32, %arg1: memref<2x2xi32, #tpu.memory_space<smem>>, %arg2: memref<2x8x16x16xf32, #tpu.memory_space<vmem>>, %arg3: memref<2x8x16x16xf32, #tpu.memory_space<vmem>>, %arg4: memref<24x16xf32, #tpu.memory_space<vmem>>) attributes {dimension_semantics = [#tpu.dimension_semantics<parallel>], iteration_bounds = array<i64: 1>, scalar_prefetch = 1 : i64, scratch_operands = 1 : i64, tpu.core_type = #tpu.core_type<tc>, window_params = [{transform_indices = @transform_0, window_bounds = array<i64: 2, 8, 16, 16>}, {transform_indices = @transform_1, window_bounds = array<i64: 2, 8, 16, 16>}]} {
    %c2_i32 = arith.constant 2 : i32
    %0 = arith.muli %arg0, %c2_i32 : i32
    %1 = tpu.iota {dimensions = array<i32: 1>} : vector<16x16xi32>
    %2 = tpu.iota {dimensions = array<i32: 0>} : vector<16x16xi32>
    %c0_i32 = arith.constant 0 : i32
    %3 = arith.addi %0, %c0_i32 : i32
    %4 = arith.index_cast %3 : i32 to index
    %c0 = arith.constant 0 : index
    %5 = memref.load %arg1[%4, %c0] : memref<2x2xi32, #tpu.memory_space<smem>>
    %6 = arith.index_cast %3 : i32 to index
    %c1 = arith.constant 1 : index
    %7 = memref.load %arg1[%6, %c1] : memref<2x2xi32, #tpu.memory_space<smem>>
    %c4_i32 = arith.constant 4 : i32
    %8 = arith.subi %5, %c4_i32 : i32
    %9 = vector.broadcast %8 : i32 to vector<16x16xi32>
    %10 = arith.addi %1, %9 : vector<16x16xi32>
    %c0_i32_0 = arith.constant 0 : i32
    %c15_i32 = arith.constant 15 : i32
    %11 = vector.broadcast %c0_i32_0 : i32 to vector<16x16xi32>
    %12 = arith.maxsi %11, %10 : vector<16x16xi32>
    %13 = vector.broadcast %c15_i32 : i32 to vector<16x16xi32>
    %14 = arith.minsi %13, %12 : vector<16x16xi32>
    %15 = arith.cmpi eq, %2, %14 : vector<16x16xi32>
    %16 = arith.extui %15 : vector<16x16xi1> to vector<16x16xi32>
    %17 = arith.sitofp %16 : vector<16x16xi32> to vector<16x16xf32>
    %c0_1 = arith.constant 0 : index
    %c0_2 = arith.constant 0 : index
    %c0_3 = arith.constant 0 : index
    %c0_4 = arith.constant 0 : index
    %18 = vector.load %arg2[%c0_1, %c0_2, %c0_3, %c0_4] : memref<2x8x16x16xf32, #tpu.memory_space<vmem>>, vector<1x1x16x16xf32>
    %19 = vector.shape_cast %18 : vector<1x1x16x16xf32> to vector<16x16xf32>
    %c4 = arith.constant 4 : index
    %c0_5 = arith.constant 0 : index
    %20 = vector.load %arg4[%c4, %c0_5] : memref<24x16xf32, #tpu.memory_space<vmem>>, vector<16x16xf32>
    tpu.vector_store %arg4[%c4, %c0_5], %19 {strides = array<i32>} : memref<24x16xf32, #tpu.memory_space<vmem>>, vector<16x16xf32>,
    %c0_6 = arith.constant 0 : index
    %c0_7 = arith.constant 0 : index
    %c0_8 = arith.constant 0 : index
    %c0_9 = arith.constant 0 : index
    %21 = vector.load %arg2[%c0_6, %c0_7, %c0_8, %c0_9] : memref<2x8x16x16xf32, #tpu.memory_space<vmem>>, vector<1x1x1x16xf32>
    %22 = vector.shape_cast %21 : vector<1x1x1x16xf32> to vector<1x16xf32>
    %23 = vector.shape_cast %22 : vector<1x16xf32> to vector<1x16xf32>
    %24 = vector.broadcast %23 : vector<1x16xf32> to vector<4x16xf32>
    %c0_10 = arith.constant 0 : index
    %c0_11 = arith.constant 0 : index
    %25 = vector.load %arg4[%c0_10, %c0_11] : memref<24x16xf32, #tpu.memory_space<vmem>>, vector<4x16xf32>
    tpu.vector_store %arg4[%c0_10, %c0_11], %24 {strides = array<i32>} : memref<24x16xf32, #tpu.memory_space<vmem>>, vector<4x16xf32>,
    %c0_12 = arith.constant 0 : index
    %c0_13 = arith.constant 0 : index
    %c15 = arith.constant 15 : index
    %c0_14 = arith.constant 0 : index
    %26 = vector.load %arg2[%c0_12, %c0_13, %c15, %c0_14] : memref<2x8x16x16xf32, #tpu.memory_space<vmem>>, vector<1x1x1x16xf32>
    %27 = vector.shape_cast %26 : vector<1x1x1x16xf32> to vector<1x16xf32>
    %28 = vector.shape_cast %27 : vector<1x16xf32> to vector<1x16xf32>
    %29 = vector.broadcast %28 : vector<1x16xf32> to vector<4x16xf32>
    %c20 = arith.constant 20 : index
    %c0_15 = arith.constant 0 : index
    %30 = vector.load %arg4[%c20, %c0_15] : memref<24x16xf32, #tpu.memory_space<vmem>>, vector<4x16xf32>
    tpu.vector_store %arg4[%c20, %c0_15], %29 {strides = array<i32>} : memref<24x16xf32, #tpu.memory_space<vmem>>, vector<4x16xf32>,
    %31 = arith.index_cast %7 : i32 to index
    %c0_16 = arith.constant 0 : index
    %32 = vector.load %arg4[%31, %c0_16] : memref<24x16xf32, #tpu.memory_space<vmem>>, vector<16x16xf32>
    %cst = arith.constant dense<0.000000e+00> : vector<16x16xf32>
    %33 = tpu.matmul %32, %17, %cst {dimension_numbers = #tpu.dot_dimension_numbers<[1], [0], [0], [1], [0, 0, 1, 1], [], []>} : vector<16x16xf32>, vector<16x16xf32>, vector<16x16xf32> -> vector<16x16xf32>
    %c0_17 = arith.constant 0 : index
    %c0_18 = arith.constant 0 : index
    %c0_19 = arith.constant 0 : index
    %c0_20 = arith.constant 0 : index
    %34 = vector.load %arg3[%c0_17, %c0_18, %c0_19, %c0_20] : memref<2x8x16x16xf32, #tpu.memory_space<vmem>>, vector<1x1x16x16xf32>
    %35 = vector.shape_cast %34 : vector<1x1x16x16xf32> to vector<16x16xf32>
    %36 = vector.shape_cast %33 : vector<16x16xf32> to vector<1x1x16x16xf32>
    tpu.vector_store %arg3[%c0_17, %c0_18, %c0_19, %c0_20], %36 {strides = array<i32>} : memref<2x8x16x16xf32, #tpu.memory_space<vmem>>, vector<1x1x16x16xf32>,
    %c0_21 = arith.constant 0 : index
    %c1_22 = arith.constant 1 : index
    %c0_23 = arith.constant 0 : index
    %c0_24 = arith.constant 0 : index
    %37 = vector.load %arg2[%c0_21, %c1_22, %c0_23, %c0_24] : memref<2x8x16x16xf32, #tpu.memory_space<vmem>>, vector<1x1x16x16xf32>
    %38 = vector.shape_cast %37 : vector<1x1x16x16xf32> to vector<16x16xf32>
    %c4_25 = arith.constant 4 : index
    %c0_26 = arith.constant 0 : index
    %39 = vector.load %arg4[%c4_25, %c0_26] : memref<24x16xf32, #tpu.memory_space<vmem>>, vector<16x16xf32>
    tpu.vector_store %arg4[%c4_25, %c0_26], %38 {strides = array<i32>} : memref<24x16xf32, #tpu.memory_space<vmem>>, vector<16x16xf32>,
    %c0_27 = arith.constant 0 : index
    %c1_28 = arith.constant 1 : index
    %c0_29 = arith.constant 0 : index
    %c0_30 = arith.constant 0 : index
    %40 = vector.load %arg2[%c0_27, %c1_28, %c0_29, %c0_30] : memref<2x8x16x16xf32, #tpu.memory_space<vmem>>, vector<1x1x1x16xf32>
    %41 = vector.shape_cast %40 : vector<1x1x1x16xf32> to vector<1x16xf32>
    %42 = vector.shape_cast %41 : vector<1x16xf32> to vector<1x16xf32>
    %43 = vector.broadcast %42 : vector<1x16xf32> to vector<4x16xf32>
    %c0_31 = arith.constant 0 : index
    %c0_32 = arith.constant 0 : index
    %44 = vector.load %arg4[%c0_31, %c0_32] : memref<24x16xf32, #tpu.memory_space<vmem>>, vector<4x16xf32>
    tpu.vector_store %arg4[%c0_31, %c0_32], %43 {strides = array<i32>} : memref<24x16xf32, #tpu.memory_space<vmem>>, vector<4x16xf32>,
    %c0_33 = arith.constant 0 : index
    %c1_34 = arith.constant 1 : index
    %c15_35 = arith.constant 15 : index
    %c0_36 = arith.constant 0 : index
    %45 = vector.load %arg2[%c0_33, %c1_34, %c15_35, %c0_36] : memref<2x8x16x16xf32, #tpu.memory_space<vmem>>, vector<1x1x1x16xf32>
    %46 = vector.shape_cast %45 : vector<1x1x1x16xf32> to vector<1x16xf32>
    %47 = vector.shape_cast %46 : vector<1x16xf32> to vector<1x16xf32>
    %48 = vector.broadcast %47 : vector<1x16xf32> to vector<4x16xf32>
    %c20_37 = arith.constant 20 : index
    %c0_38 = arith.constant 0 : index
    %49 = vector.load %arg4[%c20_37, %c0_38] : memref<24x16xf32, #tpu.memory_space<vmem>>, vector<4x16xf32>
    tpu.vector_store %arg4[%c20_37, %c0_38], %48 {strides = array<i32>} : memref<24x16xf32, #tpu.memory_space<vmem>>, vector<4x16xf32>,
    %50 = arith.index_cast %7 : i32 to index
    %c0_39 = arith.constant 0 : index
    %51 = vector.load %arg4[%50, %c0_39] : memref<24x16xf32, #tpu.memory_space<vmem>>, vector<16x16xf32>
    %cst_40 = arith.constant dense<0.000000e+00> : vector<16x16xf32>
    %52 = tpu.matmul %51, %17, %cst_40 {dimension_numbers = #tpu.dot_dimension_numbers<[1], [0], [0], [1], [0, 0, 1, 1], [], []>} : vector<16x16xf32>, vector<16x16xf32>, vector<16x16xf32> -> vector<16x16xf32>
    %c0_41 = arith.constant 0 : index
    %c1_42 = arith.constant 1 : index
    %c0_43 = arith.constant 0 : index
    %c0_44 = arith.constant 0 : index
    %53 = vector.load %arg3[%c0_41, %c1_42, %c0_43, %c0_44] : memref<2x8x16x16xf32, #tpu.memory_space<vmem>>, vector<1x1x16x16xf32>
    %54 = vector.shape_cast %53 : vector<1x1x16x16xf32> to vector<16x16xf32>
    %55 = vector.shape_cast %52 : vector<16x16xf32> to vector<1x1x16x16xf32>
    tpu.vector_store %arg3[%c0_41, %c1_42, %c0_43, %c0_44], %55 {strides = array<i32>} : memref<2x8x16x16xf32, #tpu.memory_space<vmem>>, vector<1x1x16x16xf32>,
    %c0_45 = arith.constant 0 : index
    %c2 = arith.constant 2 : index
    %c0_46 = arith.constant 0 : index
    %c0_47 = arith.constant 0 : index
    %56 = vector.load %arg2[%c0_45, %c2, %c0_46, %c0_47] : memref<2x8x16x16xf32, #tpu.memory_space<vmem>>, vector<1x1x16x16xf32>
    %57 = vector.shape_cast %56 : vector<1x1x16x16xf32> to vector<16x16xf32>
    %c4_48 = arith.constant 4 : index
    %c0_49 = arith.constant 0 : index
    %58 = vector.load %arg4[%c4_48, %c0_49] : memref<24x16xf32, #tpu.memory_space<vmem>>, vector<16x16xf32>
    tpu.vector_store %arg4[%c4_48, %c0_49], %57 {strides = array<i32>} : memref<24x16xf32, #tpu.memory_space<vmem>>, vector<16x16xf32>,
    %c0_50 = arith.constant 0 : index
    %c2_51 = arith.constant 2 : index
    %c0_52 = arith.constant 0 : index
    %c0_53 = arith.constant 0 : index
    %59 = vector.load %arg2[%c0_50, %c2_51, %c0_52, %c0_53] : memref<2x8x16x16xf32, #tpu.memory_space<vmem>>, vector<1x1x1x16xf32>
    %60 = vector.shape_cast %59 : vector<1x1x1x16xf32> to vector<1x16xf32>
    %61 = vector.shape_cast %60 : vector<1x16xf32> to vector<1x16xf32>
    %62 = vector.broadcast %61 : vector<1x16xf32> to vector<4x16xf32>
    %c0_54 = arith.constant 0 : index
    %c0_55 = arith.constant 0 : index
    %63 = vector.load %arg4[%c0_54, %c0_55] : memref<24x16xf32, #tpu.memory_space<vmem>>, vector<4x16xf32>
    tpu.vector_store %arg4[%c0_54, %c0_55], %62 {strides = array<i32>} : memref<24x16xf32, #tpu.memory_space<vmem>>, vector<4x16xf32>,
    %c0_56 = arith.constant 0 : index
    %c2_57 = arith.constant 2 : index
    %c15_58 = arith.constant 15 : index
    %c0_59 = arith.constant 0 : index
    %64 = vector.load %arg2[%c0_56, %c2_57, %c15_58, %c0_59] : memref<2x8x16x16xf32, #tpu.memory_space<vmem>>, vector<1x1x1x16xf32>
    %65 = vector.shape_cast %64 : vector<1x1x1x16xf32> to vector<1x16xf32>
    %66 = vector.shape_cast %65 : vector<1x16xf32> to vector<1x16xf32>
    %67 = vector.broadcast %66 : vector<1x16xf32> to vector<4x16xf32>
    %c20_60 = arith.constant 20 : index
    %c0_61 = arith.constant 0 : index
    %68 = vector.load %arg4[%c20_60, %c0_61] : memref<24x16xf32, #tpu.memory_space<vmem>>, vector<4x16xf32>
    tpu.vector_store %arg4[%c20_60, %c0_61], %67 {strides = array<i32>} : memref<24x16xf32, #tpu.memory_space<vmem>>, vector<4x16xf32>,
    %69 = arith.index_cast %7 : i32 to index
    %c0_62 = arith.constant 0 : index
    %70 = vector.load %arg4[%69, %c0_62] : memref<24x16xf32, #tpu.memory_space<vmem>>, vector<16x16xf32>
    %cst_63 = arith.constant dense<0.000000e+00> : vector<16x16xf32>
    %71 = tpu.matmul %70, %17, %cst_63 {dimension_numbers = #tpu.dot_dimension_numbers<[1], [0], [0], [1], [0, 0, 1, 1], [], []>} : vector<16x16xf32>, vector<16x16xf32>, vector<16x16xf32> -> vector<16x16xf32>
    %c0_64 = arith.constant 0 : index
    %c2_65 = arith.constant 2 : index
    %c0_66 = arith.constant 0 : index
    %c0_67 = arith.constant 0 : index
    %72 = vector.load %arg3[%c0_64, %c2_65, %c0_66, %c0_67] : memref<2x8x16x16xf32, #tpu.memory_space<vmem>>, vector<1x1x16x16xf32>
    %73 = vector.shape_cast %72 : vector<1x1x16x16xf32> to vector<16x16xf32>
    %74 = vector.shape_cast %71 : vector<16x16xf32> to vector<1x1x16x16xf32>
    tpu.vector_store %arg3[%c0_64, %c2_65, %c0_66, %c0_67], %74 {strides = array<i32>} : memref<2x8x16x16xf32, #tpu.memory_space<vmem>>, vector<1x1x16x16xf32>,
    %c0_68 = arith.constant 0 : index
    %c3 = arith.constant 3 : index
    %c0_69 = arith.constant 0 : index
    %c0_70 = arith.constant 0 : index
    %75 = vector.load %arg2[%c0_68, %c3, %c0_69, %c0_70] : memref<2x8x16x16xf32, #tpu.memory_space<vmem>>, vector<1x1x16x16xf32>
    %76 = vector.shape_cast %75 : vector<1x1x16x16xf32> to vector<16x16xf32>
    %c4_71 = arith.constant 4 : index
    %c0_72 = arith.constant 0 : index
    %77 = vector.load %arg4[%c4_71, %c0_72] : memref<24x16xf32, #tpu.memory_space<vmem>>, vector<16x16xf32>
    tpu.vector_store %arg4[%c4_71, %c0_72], %76 {strides = array<i32>} : memref<24x16xf32, #tpu.memory_space<vmem>>, vector<16x16xf32>,
    %c0_73 = arith.constant 0 : index
    %c3_74 = arith.constant 3 : index
    %c0_75 = arith.constant 0 : index
    %c0_76 = arith.constant 0 : index
    %78 = vector.load %arg2[%c0_73, %c3_74, %c0_75, %c0_76] : memref<2x8x16x16xf32, #tpu.memory_space<vmem>>, vector<1x1x1x16xf32>
    %79 = vector.shape_cast %78 : vector<1x1x1x16xf32> to vector<1x16xf32>
    %80 = vector.shape_cast %79 : vector<1x16xf32> to vector<1x16xf32>
    %81 = vector.broadcast %80 : vector<1x16xf32> to vector<4x16xf32>
    %c0_77 = arith.constant 0 : index
    %c0_78 = arith.constant 0 : index
    %82 = vector.load %arg4[%c0_77, %c0_78] : memref<24x16xf32, #tpu.memory_space<vmem>>, vector<4x16xf32>
    tpu.vector_store %arg4[%c0_77, %c0_78], %81 {strides = array<i32>} : memref<24x16xf32, #tpu.memory_space<vmem>>, vector<4x16xf32>,
    %c0_79 = arith.constant 0 : index
    %c3_80 = arith.constant 3 : index
    %c15_81 = arith.constant 15 : index
    %c0_82 = arith.constant 0 : index
    %83 = vector.load %arg2[%c0_79, %c3_80, %c15_81, %c0_82] : memref<2x8x16x16xf32, #tpu.memory_space<vmem>>, vector<1x1x1x16xf32>
    %84 = vector.shape_cast %83 : vector<1x1x1x16xf32> to vector<1x16xf32>
    %85 = vector.shape_cast %84 : vector<1x16xf32> to vector<1x16xf32>
    %86 = vector.broadcast %85 : vector<1x16xf32> to vector<4x16xf32>
    %c20_83 = arith.constant 20 : index
    %c0_84 = arith.constant 0 : index
    %87 = vector.load %arg4[%c20_83, %c0_84] : memref<24x16xf32, #tpu.memory_space<vmem>>, vector<4x16xf32>
    tpu.vector_store %arg4[%c20_83, %c0_84], %86 {strides = array<i32>} : memref<24x16xf32, #tpu.memory_space<vmem>>, vector<4x16xf32>,
    %88 = arith.index_cast %7 : i32 to index
    %c0_85 = arith.constant 0 : index
    %89 = vector.load %arg4[%88, %c0_85] : memref<24x16xf32, #tpu.memory_space<vmem>>, vector<16x16xf32>
    %cst_86 = arith.constant dense<0.000000e+00> : vector<16x16xf32>
    %90 = tpu.matmul %89, %17, %cst_86 {dimension_numbers = #tpu.dot_dimension_numbers<[1], [0], [0], [1], [0, 0, 1, 1], [], []>} : vector<16x16xf32>, vector<16x16xf32>, vector<16x16xf32> -> vector<16x16xf32>
    %c0_87 = arith.constant 0 : index
    %c3_88 = arith.constant 3 : index
    %c0_89 = arith.constant 0 : index
    %c0_90 = arith.constant 0 : index
    %91 = vector.load %arg3[%c0_87, %c3_88, %c0_89, %c0_90] : memref<2x8x16x16xf32, #tpu.memory_space<vmem>>, vector<1x1x16x16xf32>
    %92 = vector.shape_cast %91 : vector<1x1x16x16xf32> to vector<16x16xf32>
    %93 = vector.shape_cast %90 : vector<16x16xf32> to vector<1x1x16x16xf32>
    tpu.vector_store %arg3[%c0_87, %c3_88, %c0_89, %c0_90], %93 {strides = array<i32>} : memref<2x8x16x16xf32, #tpu.memory_space<vmem>>, vector<1x1x16x16xf32>,
    %c0_91 = arith.constant 0 : index
    %c4_92 = arith.constant 4 : index
    %c0_93 = arith.constant 0 : index
    %c0_94 = arith.constant 0 : index
    %94 = vector.load %arg2[%c0_91, %c4_92, %c0_93, %c0_94] : memref<2x8x16x16xf32, #tpu.memory_space<vmem>>, vector<1x1x16x16xf32>
    %95 = vector.shape_cast %94 : vector<1x1x16x16xf32> to vector<16x16xf32>
    %c4_95 = arith.constant 4 : index
    %c0_96 = arith.constant 0 : index
    %96 = vector.load %arg4[%c4_95, %c0_96] : memref<24x16xf32, #tpu.memory_space<vmem>>, vector<16x16xf32>
    tpu.vector_store %arg4[%c4_95, %c0_96], %95 {strides = array<i32>} : memref<24x16xf32, #tpu.memory_space<vmem>>, vector<16x16xf32>,
    %c0_97 = arith.constant 0 : index
    %c4_98 = arith.constant 4 : index
    %c0_99 = arith.constant 0 : index
    %c0_100 = arith.constant 0 : index
    %97 = vector.load %arg2[%c0_97, %c4_98, %c0_99, %c0_100] : memref<2x8x16x16xf32, #tpu.memory_space<vmem>>, vector<1x1x1x16xf32>
    %98 = vector.shape_cast %97 : vector<1x1x1x16xf32> to vector<1x16xf32>
    %99 = vector.shape_cast %98 : vector<1x16xf32> to vector<1x16xf32>
    %100 = vector.broadcast %99 : vector<1x16xf32> to vector<4x16xf32>
    %c0_101 = arith.constant 0 : index
    %c0_102 = arith.constant 0 : index
    %101 = vector.load %arg4[%c0_101, %c0_102] : memref<24x16xf32, #tpu.memory_space<vmem>>, vector<4x16xf32>
    tpu.vector_store %arg4[%c0_101, %c0_102], %100 {strides = array<i32>} : memref<24x16xf32, #tpu.memory_space<vmem>>, vector<4x16xf32>,
    %c0_103 = arith.constant 0 : index
    %c4_104 = arith.constant 4 : index
    %c15_105 = arith.constant 15 : index
    %c0_106 = arith.constant 0 : index
    %102 = vector.load %arg2[%c0_103, %c4_104, %c15_105, %c0_106] : memref<2x8x16x16xf32, #tpu.memory_space<vmem>>, vector<1x1x1x16xf32>
    %103 = vector.shape_cast %102 : vector<1x1x1x16xf32> to vector<1x16xf32>
    %104 = vector.shape_cast %103 : vector<1x16xf32> to vector<1x16xf32>
    %105 = vector.broadcast %104 : vector<1x16xf32> to vector<4x16xf32>
    %c20_107 = arith.constant 20 : index
    %c0_108 = arith.constant 0 : index
    %106 = vector.load %arg4[%c20_107, %c0_108] : memref<24x16xf32, #tpu.memory_space<vmem>>, vector<4x16xf32>
    tpu.vector_store %arg4[%c20_107, %c0_108], %105 {strides = array<i32>} : memref<24x16xf32, #tpu.memory_space<vmem>>, vector<4x16xf32>,
    %107 = arith.index_cast %7 : i32 to index
    %c0_109 = arith.constant 0 : index
    %108 = vector.load %arg4[%107, %c0_109] : memref<24x16xf32, #tpu.memory_space<vmem>>, vector<16x16xf32>
    %cst_110 = arith.constant dense<0.000000e+00> : vector<16x16xf32>
    %109 = tpu.matmul %108, %17, %cst_110 {dimension_numbers = #tpu.dot_dimension_numbers<[1], [0], [0], [1], [0, 0, 1, 1], [], []>} : vector<16x16xf32>, vector<16x16xf32>, vector<16x16xf32> -> vector<16x16xf32>
    %c0_111 = arith.constant 0 : index
    %c4_112 = arith.constant 4 : index
    %c0_113 = arith.constant 0 : index
    %c0_114 = arith.constant 0 : index
    %110 = vector.load %arg3[%c0_111, %c4_112, %c0_113, %c0_114] : memref<2x8x16x16xf32, #tpu.memory_space<vmem>>, vector<1x1x16x16xf32>
    %111 = vector.shape_cast %110 : vector<1x1x16x16xf32> to vector<16x16xf32>
    %112 = vector.shape_cast %109 : vector<16x16xf32> to vector<1x1x16x16xf32>
    tpu.vector_store %arg3[%c0_111, %c4_112, %c0_113, %c0_114], %112 {strides = array<i32>} : memref<2x8x16x16xf32, #tpu.memory_space<vmem>>, vector<1x1x16x16xf32>,
    %c0_115 = arith.constant 0 : index
    %c5 = arith.constant 5 : index
    %c0_116 = arith.constant 0 : index
    %c0_117 = arith.constant 0 : index
    %113 = vector.load %arg2[%c0_115, %c5, %c0_116, %c0_117] : memref<2x8x16x16xf32, #tpu.memory_space<vmem>>, vector<1x1x16x16xf32>
    %114 = vector.shape_cast %113 : vector<1x1x16x16xf32> to vector<16x16xf32>
    %c4_118 = arith.constant 4 : index
    %c0_119 = arith.constant 0 : index
    %115 = vector.load %arg4[%c4_118, %c0_119] : memref<24x16xf32, #tpu.memory_space<vmem>>, vector<16x16xf32>
    tpu.vector_store %arg4[%c4_118, %c0_119], %114 {strides = array<i32>} : memref<24x16xf32, #tpu.memory_space<vmem>>, vector<16x16xf32>,
    %c0_120 = arith.constant 0 : index
    %c5_121 = arith.constant 5 : index
    %c0_122 = arith.constant 0 : index
    %c0_123 = arith.constant 0 : index
    %116 = vector.load %arg2[%c0_120, %c5_121, %c0_122, %c0_123] : memref<2x8x16x16xf32, #tpu.memory_space<vmem>>, vector<1x1x1x16xf32>
    %117 = vector.shape_cast %116 : vector<1x1x1x16xf32> to vector<1x16xf32>
    %118 = vector.shape_cast %117 : vector<1x16xf32> to vector<1x16xf32>
    %119 = vector.broadcast %118 : vector<1x16xf32> to vector<4x16xf32>
    %c0_124 = arith.constant 0 : index
    %c0_125 = arith.constant 0 : index
    %120 = vector.load %arg4[%c0_124, %c0_125] : memref<24x16xf32, #tpu.memory_space<vmem>>, vector<4x16xf32>
    tpu.vector_store %arg4[%c0_124, %c0_125], %119 {strides = array<i32>} : memref<24x16xf32, #tpu.memory_space<vmem>>, vector<4x16xf32>,
    %c0_126 = arith.constant 0 : index
    %c5_127 = arith.constant 5 : index
    %c15_128 = arith.constant 15 : index
    %c0_129 = arith.constant 0 : index
    %121 = vector.load %arg2[%c0_126, %c5_127, %c15_128, %c0_129] : memref<2x8x16x16xf32, #tpu.memory_space<vmem>>, vector<1x1x1x16xf32>
    %122 = vector.shape_cast %121 : vector<1x1x1x16xf32> to vector<1x16xf32>
    %123 = vector.shape_cast %122 : vector<1x16xf32> to vector<1x16xf32>
    %124 = vector.broadcast %123 : vector<1x16xf32> to vector<4x16xf32>
    %c20_130 = arith.constant 20 : index
    %c0_131 = arith.constant 0 : index
    %125 = vector.load %arg4[%c20_130, %c0_131] : memref<24x16xf32, #tpu.memory_space<vmem>>, vector<4x16xf32>
    tpu.vector_store %arg4[%c20_130, %c0_131], %124 {strides = array<i32>} : memref<24x16xf32, #tpu.memory_space<vmem>>, vector<4x16xf32>,
    %126 = arith.index_cast %7 : i32 to index
    %c0_132 = arith.constant 0 : index
    %127 = vector.load %arg4[%126, %c0_132] : memref<24x16xf32, #tpu.memory_space<vmem>>, vector<16x16xf32>
    %cst_133 = arith.constant dense<0.000000e+00> : vector<16x16xf32>
    %128 = tpu.matmul %127, %17, %cst_133 {dimension_numbers = #tpu.dot_dimension_numbers<[1], [0], [0], [1], [0, 0, 1, 1], [], []>} : vector<16x16xf32>, vector<16x16xf32>, vector<16x16xf32> -> vector<16x16xf32>
    %c0_134 = arith.constant 0 : index
    %c5_135 = arith.constant 5 : index
    %c0_136 = arith.constant 0 : index
    %c0_137 = arith.constant 0 : index
    %129 = vector.load %arg3[%c0_134, %c5_135, %c0_136, %c0_137] : memref<2x8x16x16xf32, #tpu.memory_space<vmem>>, vector<1x1x16x16xf32>
    %130 = vector.shape_cast %129 : vector<1x1x16x16xf32> to vector<16x16xf32>
    %131 = vector.shape_cast %128 : vector<16x16xf32> to vector<1x1x16x16xf32>
    tpu.vector_store %arg3[%c0_134, %c5_135, %c0_136, %c0_137], %131 {strides = array<i32>} : memref<2x8x16x16xf32, #tpu.memory_space<vmem>>, vector<1x1x16x16xf32>,
    %c0_138 = arith.constant 0 : index
    %c6 = arith.constant 6 : index
    %c0_139 = arith.constant 0 : index
    %c0_140 = arith.constant 0 : index
    %132 = vector.load %arg2[%c0_138, %c6, %c0_139, %c0_140] : memref<2x8x16x16xf32, #tpu.memory_space<vmem>>, vector<1x1x16x16xf32>
    %133 = vector.shape_cast %132 : vector<1x1x16x16xf32> to vector<16x16xf32>
    %c4_141 = arith.constant 4 : index
    %c0_142 = arith.constant 0 : index
    %134 = vector.load %arg4[%c4_141, %c0_142] : memref<24x16xf32, #tpu.memory_space<vmem>>, vector<16x16xf32>
    tpu.vector_store %arg4[%c4_141, %c0_142], %133 {strides = array<i32>} : memref<24x16xf32, #tpu.memory_space<vmem>>, vector<16x16xf32>,
    %c0_143 = arith.constant 0 : index
    %c6_144 = arith.constant 6 : index
    %c0_145 = arith.constant 0 : index
    %c0_146 = arith.constant 0 : index
    %135 = vector.load %arg2[%c0_143, %c6_144, %c0_145, %c0_146] : memref<2x8x16x16xf32, #tpu.memory_space<vmem>>, vector<1x1x1x16xf32>
    %136 = vector.shape_cast %135 : vector<1x1x1x16xf32> to vector<1x16xf32>
    %137 = vector.shape_cast %136 : vector<1x16xf32> to vector<1x16xf32>
    %138 = vector.broadcast %137 : vector<1x16xf32> to vector<4x16xf32>
    %c0_147 = arith.constant 0 : index
    %c0_148 = arith.constant 0 : index
    %139 = vector.load %arg4[%c0_147, %c0_148] : memref<24x16xf32, #tpu.memory_space<vmem>>, vector<4x16xf32>
    tpu.vector_store %arg4[%c0_147, %c0_148], %138 {strides = array<i32>} : memref<24x16xf32, #tpu.memory_space<vmem>>, vector<4x16xf32>,
    %c0_149 = arith.constant 0 : index
    %c6_150 = arith.constant 6 : index
    %c15_151 = arith.constant 15 : index
    %c0_152 = arith.constant 0 : index
    %140 = vector.load %arg2[%c0_149, %c6_150, %c15_151, %c0_152] : memref<2x8x16x16xf32, #tpu.memory_space<vmem>>, vector<1x1x1x16xf32>
    %141 = vector.shape_cast %140 : vector<1x1x1x16xf32> to vector<1x16xf32>
    %142 = vector.shape_cast %141 : vector<1x16xf32> to vector<1x16xf32>
    %143 = vector.broadcast %142 : vector<1x16xf32> to vector<4x16xf32>
    %c20_153 = arith.constant 20 : index
    %c0_154 = arith.constant 0 : index
    %144 = vector.load %arg4[%c20_153, %c0_154] : memref<24x16xf32, #tpu.memory_space<vmem>>, vector<4x16xf32>
    tpu.vector_store %arg4[%c20_153, %c0_154], %143 {strides = array<i32>} : memref<24x16xf32, #tpu.memory_space<vmem>>, vector<4x16xf32>,
    %145 = arith.index_cast %7 : i32 to index
    %c0_155 = arith.constant 0 : index
    %146 = vector.load %arg4[%145, %c0_155] : memref<24x16xf32, #tpu.memory_space<vmem>>, vector<16x16xf32>
    %cst_156 = arith.constant dense<0.000000e+00> : vector<16x16xf32>
    %147 = tpu.matmul %146, %17, %cst_156 {dimension_numbers = #tpu.dot_dimension_numbers<[1], [0], [0], [1], [0, 0, 1, 1], [], []>} : vector<16x16xf32>, vector<16x16xf32>, vector<16x16xf32> -> vector<16x16xf32>
    %c0_157 = arith.constant 0 : index
    %c6_158 = arith.constant 6 : index
    %c0_159 = arith.constant 0 : index
    %c0_160 = arith.constant 0 : index
    %148 = vector.load %arg3[%c0_157, %c6_158, %c0_159, %c0_160] : memref<2x8x16x16xf32, #tpu.memory_space<vmem>>, vector<1x1x16x16xf32>
    %149 = vector.shape_cast %148 : vector<1x1x16x16xf32> to vector<16x16xf32>
    %150 = vector.shape_cast %147 : vector<16x16xf32> to vector<1x1x16x16xf32>
    tpu.vector_store %arg3[%c0_157, %c6_158, %c0_159, %c0_160], %150 {strides = array<i32>} : memref<2x8x16x16xf32, #tpu.memory_space<vmem>>, vector<1x1x16x16xf32>,
    %c0_161 = arith.constant 0 : index
    %c7 = arith.constant 7 : index
    %c0_162 = arith.constant 0 : index
    %c0_163 = arith.constant 0 : index
    %151 = vector.load %arg2[%c0_161, %c7, %c0_162, %c0_163] : memref<2x8x16x16xf32, #tpu.memory_space<vmem>>, vector<1x1x16x16xf32>
    %152 = vector.shape_cast %151 : vector<1x1x16x16xf32> to vector<16x16xf32>
    %c4_164 = arith.constant 4 : index
    %c0_165 = arith.constant 0 : index
    %153 = vector.load %arg4[%c4_164, %c0_165] : memref<24x16xf32, #tpu.memory_space<vmem>>, vector<16x16xf32>
    tpu.vector_store %arg4[%c4_164, %c0_165], %152 {strides = array<i32>} : memref<24x16xf32, #tpu.memory_space<vmem>>, vector<16x16xf32>,
    %c0_166 = arith.constant 0 : index
    %c7_167 = arith.constant 7 : index
    %c0_168 = arith.constant 0 : index
    %c0_169 = arith.constant 0 : index
    %154 = vector.load %arg2[%c0_166, %c7_167, %c0_168, %c0_169] : memref<2x8x16x16xf32, #tpu.memory_space<vmem>>, vector<1x1x1x16xf32>
    %155 = vector.shape_cast %154 : vector<1x1x1x16xf32> to vector<1x16xf32>
    %156 = vector.shape_cast %155 : vector<1x16xf32> to vector<1x16xf32>
    %157 = vector.broadcast %156 : vector<1x16xf32> to vector<4x16xf32>
    %c0_170 = arith.constant 0 : index
    %c0_171 = arith.constant 0 : index
    %158 = vector.load %arg4[%c0_170, %c0_171] : memref<24x16xf32, #tpu.memory_space<vmem>>, vector<4x16xf32>
    tpu.vector_store %arg4[%c0_170, %c0_171], %157 {strides = array<i32>} : memref<24x16xf32, #tpu.memory_space<vmem>>, vector<4x16xf32>,
    %c0_172 = arith.constant 0 : index
    %c7_173 = arith.constant 7 : index
    %c15_174 = arith.constant 15 : index
    %c0_175 = arith.constant 0 : index
    %159 = vector.load %arg2[%c0_172, %c7_173, %c15_174, %c0_175] : memref<2x8x16x16xf32, #tpu.memory_space<vmem>>, vector<1x1x1x16xf32>
    %160 = vector.shape_cast %159 : vector<1x1x1x16xf32> to vector<1x16xf32>
    %161 = vector.shape_cast %160 : vector<1x16xf32> to vector<1x16xf32>
    %162 = vector.broadcast %161 : vector<1x16xf32> to vector<4x16xf32>
    %c20_176 = arith.constant 20 : index
    %c0_177 = arith.constant 0 : index
    %163 = vector.load %arg4[%c20_176, %c0_177] : memref<24x16xf32, #tpu.memory_space<vmem>>, vector<4x16xf32>
    tpu.vector_store %arg4[%c20_176, %c0_177], %162 {strides = array<i32>} : memref<24x16xf32, #tpu.memory_space<vmem>>, vector<4x16xf32>,
    %164 = arith.index_cast %7 : i32 to index
    %c0_178 = arith.constant 0 : index
    %165 = vector.load %arg4[%164, %c0_178] : memref<24x16xf32, #tpu.memory_space<vmem>>, vector<16x16xf32>
    %cst_179 = arith.constant dense<0.000000e+00> : vector<16x16xf32>
    %166 = tpu.matmul %165, %17, %cst_179 {dimension_numbers = #tpu.dot_dimension_numbers<[1], [0], [0], [1], [0, 0, 1, 1], [], []>} : vector<16x16xf32>, vector<16x16xf32>, vector<16x16xf32> -> vector<16x16xf32>
    %c0_180 = arith.constant 0 : index
    %c7_181 = arith.constant 7 : index
    %c0_182 = arith.constant 0 : index
    %c0_183 = arith.constant 0 : index
    %167 = vector.load %arg3[%c0_180, %c7_181, %c0_182, %c0_183] : memref<2x8x16x16xf32, #tpu.memory_space<vmem>>, vector<1x1x16x16xf32>
    %168 = vector.shape_cast %167 : vector<1x1x16x16xf32> to vector<16x16xf32>
    %169 = vector.shape_cast %166 : vector<16x16xf32> to vector<1x1x16x16xf32>
    tpu.vector_store %arg3[%c0_180, %c7_181, %c0_182, %c0_183], %169 {strides = array<i32>} : memref<2x8x16x16xf32, #tpu.memory_space<vmem>>, vector<1x1x16x16xf32>,
    %c1_i32 = arith.constant 1 : i32
    %170 = arith.addi %0, %c1_i32 : i32
    %171 = arith.index_cast %170 : i32 to index
    %c0_184 = arith.constant 0 : index
    %172 = memref.load %arg1[%171, %c0_184] : memref<2x2xi32, #tpu.memory_space<smem>>
    %173 = arith.index_cast %170 : i32 to index
    %c1_185 = arith.constant 1 : index
    %174 = memref.load %arg1[%173, %c1_185] : memref<2x2xi32, #tpu.memory_space<smem>>
    %c4_i32_186 = arith.constant 4 : i32
    %175 = arith.subi %172, %c4_i32_186 : i32
    %176 = vector.broadcast %175 : i32 to vector<16x16xi32>
    %177 = arith.addi %1, %176 : vector<16x16xi32>
    %c0_i32_187 = arith.constant 0 : i32
    %c15_i32_188 = arith.constant 15 : i32
    %178 = vector.broadcast %c0_i32_187 : i32 to vector<16x16xi32>
    %179 = arith.maxsi %178, %177 : vector<16x16xi32>
    %180 = vector.broadcast %c15_i32_188 : i32 to vector<16x16xi32>
    %181 = arith.minsi %180, %179 : vector<16x16xi32>
    %182 = arith.cmpi eq, %2, %181 : vector<16x16xi32>
    %183 = arith.extui %182 : vector<16x16xi1> to vector<16x16xi32>
    %184 = arith.sitofp %183 : vector<16x16xi32> to vector<16x16xf32>
    %c1_189 = arith.constant 1 : index
    %c0_190 = arith.constant 0 : index
    %c0_191 = arith.constant 0 : index
    %c0_192 = arith.constant 0 : index
    %185 = vector.load %arg2[%c1_189, %c0_190, %c0_191, %c0_192] : memref<2x8x16x16xf32, #tpu.memory_space<vmem>>, vector<1x1x16x16xf32>
    %186 = vector.shape_cast %185 : vector<1x1x16x16xf32> to vector<16x16xf32>
    %c4_193 = arith.constant 4 : index
    %c0_194 = arith.constant 0 : index
    %187 = vector.load %arg4[%c4_193, %c0_194] : memref<24x16xf32, #tpu.memory_space<vmem>>, vector<16x16xf32>
    tpu.vector_store %arg4[%c4_193, %c0_194], %186 {strides = array<i32>} : memref<24x16xf32, #tpu.memory_space<vmem>>, vector<16x16xf32>,
    %c1_195 = arith.constant 1 : index
    %c0_196 = arith.constant 0 : index
    %c0_197 = arith.constant 0 : index
    %c0_198 = arith.constant 0 : index
    %188 = vector.load %arg2[%c1_195, %c0_196, %c0_197, %c0_198] : memref<2x8x16x16xf32, #tpu.memory_space<vmem>>, vector<1x1x1x16xf32>
    %189 = vector.shape_cast %188 : vector<1x1x1x16xf32> to vector<1x16xf32>
    %190 = vector.shape_cast %189 : vector<1x16xf32> to vector<1x16xf32>
    %191 = vector.broadcast %190 : vector<1x16xf32> to vector<4x16xf32>
    %c0_199 = arith.constant 0 : index
    %c0_200 = arith.constant 0 : index
    %192 = vector.load %arg4[%c0_199, %c0_200] : memref<24x16xf32, #tpu.memory_space<vmem>>, vector<4x16xf32>
    tpu.vector_store %arg4[%c0_199, %c0_200], %191 {strides = array<i32>} : memref<24x16xf32, #tpu.memory_space<vmem>>, vector<4x16xf32>,
    %c1_201 = arith.constant 1 : index
    %c0_202 = arith.constant 0 : index
    %c15_203 = arith.constant 15 : index
    %c0_204 = arith.constant 0 : index
    %193 = vector.load %arg2[%c1_201, %c0_202, %c15_203, %c0_204] : memref<2x8x16x16xf32, #tpu.memory_space<vmem>>, vector<1x1x1x16xf32>
    %194 = vector.shape_cast %193 : vector<1x1x1x16xf32> to vector<1x16xf32>
    %195 = vector.shape_cast %194 : vector<1x16xf32> to vector<1x16xf32>
    %196 = vector.broadcast %195 : vector<1x16xf32> to vector<4x16xf32>
    %c20_205 = arith.constant 20 : index
    %c0_206 = arith.constant 0 : index
    %197 = vector.load %arg4[%c20_205, %c0_206] : memref<24x16xf32, #tpu.memory_space<vmem>>, vector<4x16xf32>
    tpu.vector_store %arg4[%c20_205, %c0_206], %196 {strides = array<i32>} : memref<24x16xf32, #tpu.memory_space<vmem>>, vector<4x16xf32>,
    %198 = arith.index_cast %174 : i32 to index
    %c0_207 = arith.constant 0 : index
    %199 = vector.load %arg4[%198, %c0_207] : memref<24x16xf32, #tpu.memory_space<vmem>>, vector<16x16xf32>
    %cst_208 = arith.constant dense<0.000000e+00> : vector<16x16xf32>
    %200 = tpu.matmul %199, %184, %cst_208 {dimension_numbers = #tpu.dot_dimension_numbers<[1], [0], [0], [1], [0, 0, 1, 1], [], []>} : vector<16x16xf32>, vector<16x16xf32>, vector<16x16xf32> -> vector<16x16xf32>
    %c1_209 = arith.constant 1 : index
    %c0_210 = arith.constant 0 : index
    %c0_211 = arith.constant 0 : index
    %c0_212 = arith.constant 0 : index
    %201 = vector.load %arg3[%c1_209, %c0_210, %c0_211, %c0_212] : memref<2x8x16x16xf32, #tpu.memory_space<vmem>>, vector<1x1x16x16xf32>
    %202 = vector.shape_cast %201 : vector<1x1x16x16xf32> to vector<16x16xf32>
    %203 = vector.shape_cast %200 : vector<16x16xf32> to vector<1x1x16x16xf32>
    tpu.vector_store %arg3[%c1_209, %c0_210, %c0_211, %c0_212], %203 {strides = array<i32>} : memref<2x8x16x16xf32, #tpu.memory_space<vmem>>, vector<1x1x16x16xf32>,
    %c1_213 = arith.constant 1 : index
    %c1_214 = arith.constant 1 : index
    %c0_215 = arith.constant 0 : index
    %c0_216 = arith.constant 0 : index
    %204 = vector.load %arg2[%c1_213, %c1_214, %c0_215, %c0_216] : memref<2x8x16x16xf32, #tpu.memory_space<vmem>>, vector<1x1x16x16xf32>
    %205 = vector.shape_cast %204 : vector<1x1x16x16xf32> to vector<16x16xf32>
    %c4_217 = arith.constant 4 : index
    %c0_218 = arith.constant 0 : index
    %206 = vector.load %arg4[%c4_217, %c0_218] : memref<24x16xf32, #tpu.memory_space<vmem>>, vector<16x16xf32>
    tpu.vector_store %arg4[%c4_217, %c0_218], %205 {strides = array<i32>} : memref<24x16xf32, #tpu.memory_space<vmem>>, vector<16x16xf32>,
    %c1_219 = arith.constant 1 : index
    %c1_220 = arith.constant 1 : index
    %c0_221 = arith.constant 0 : index
    %c0_222 = arith.constant 0 : index
    %207 = vector.load %arg2[%c1_219, %c1_220, %c0_221, %c0_222] : memref<2x8x16x16xf32, #tpu.memory_space<vmem>>, vector<1x1x1x16xf32>
    %208 = vector.shape_cast %207 : vector<1x1x1x16xf32> to vector<1x16xf32>
    %209 = vector.shape_cast %208 : vector<1x16xf32> to vector<1x16xf32>
    %210 = vector.broadcast %209 : vector<1x16xf32> to vector<4x16xf32>
    %c0_223 = arith.constant 0 : index
    %c0_224 = arith.constant 0 : index
    %211 = vector.load %arg4[%c0_223, %c0_224] : memref<24x16xf32, #tpu.memory_space<vmem>>, vector<4x16xf32>
    tpu.vector_store %arg4[%c0_223, %c0_224], %210 {strides = array<i32>} : memref<24x16xf32, #tpu.memory_space<vmem>>, vector<4x16xf32>,
    %c1_225 = arith.constant 1 : index
    %c1_226 = arith.constant 1 : index
    %c15_227 = arith.constant 15 : index
    %c0_228 = arith.constant 0 : index
    %212 = vector.load %arg2[%c1_225, %c1_226, %c15_227, %c0_228] : memref<2x8x16x16xf32, #tpu.memory_space<vmem>>, vector<1x1x1x16xf32>
    %213 = vector.shape_cast %212 : vector<1x1x1x16xf32> to vector<1x16xf32>
    %214 = vector.shape_cast %213 : vector<1x16xf32> to vector<1x16xf32>
    %215 = vector.broadcast %214 : vector<1x16xf32> to vector<4x16xf32>
    %c20_229 = arith.constant 20 : index
    %c0_230 = arith.constant 0 : index
    %216 = vector.load %arg4[%c20_229, %c0_230] : memref<24x16xf32, #tpu.memory_space<vmem>>, vector<4x16xf32>
    tpu.vector_store %arg4[%c20_229, %c0_230], %215 {strides = array<i32>} : memref<24x16xf32, #tpu.memory_space<vmem>>, vector<4x16xf32>,
    %217 = arith.index_cast %174 : i32 to index
    %c0_231 = arith.constant 0 : index
    %218 = vector.load %arg4[%217, %c0_231] : memref<24x16xf32, #tpu.memory_space<vmem>>, vector<16x16xf32>
    %cst_232 = arith.constant dense<0.000000e+00> : vector<16x16xf32>
    %219 = tpu.matmul %218, %184, %cst_232 {dimension_numbers = #tpu.dot_dimension_numbers<[1], [0], [0], [1], [0, 0, 1, 1], [], []>} : vector<16x16xf32>, vector<16x16xf32>, vector<16x16xf32> -> vector<16x16xf32>
    %c1_233 = arith.constant 1 : index
    %c1_234 = arith.constant 1 : index
    %c0_235 = arith.constant 0 : index
    %c0_236 = arith.constant 0 : index
    %220 = vector.load %arg3[%c1_233, %c1_234, %c0_235, %c0_236] : memref<2x8x16x16xf32, #tpu.memory_space<vmem>>, vector<1x1x16x16xf32>
    %221 = vector.shape_cast %220 : vector<1x1x16x16xf32> to vector<16x16xf32>
    %222 = vector.shape_cast %219 : vector<16x16xf32> to vector<1x1x16x16xf32>
    tpu.vector_store %arg3[%c1_233, %c1_234, %c0_235, %c0_236], %222 {strides = array<i32>} : memref<2x8x16x16xf32, #tpu.memory_space<vmem>>, vector<1x1x16x16xf32>,
    %c1_237 = arith.constant 1 : index
    %c2_238 = arith.constant 2 : index
    %c0_239 = arith.constant 0 : index
    %c0_240 = arith.constant 0 : index
    %223 = vector.load %arg2[%c1_237, %c2_238, %c0_239, %c0_240] : memref<2x8x16x16xf32, #tpu.memory_space<vmem>>, vector<1x1x16x16xf32>
    %224 = vector.shape_cast %223 : vector<1x1x16x16xf32> to vector<16x16xf32>
    %c4_241 = arith.constant 4 : index
    %c0_242 = arith.constant 0 : index
    %225 = vector.load %arg4[%c4_241, %c0_242] : memref<24x16xf32, #tpu.memory_space<vmem>>, vector<16x16xf32>
    tpu.vector_store %arg4[%c4_241, %c0_242], %224 {strides = array<i32>} : memref<24x16xf32, #tpu.memory_space<vmem>>, vector<16x16xf32>,
    %c1_243 = arith.constant 1 : index
    %c2_244 = arith.constant 2 : index
    %c0_245 = arith.constant 0 : index
    %c0_246 = arith.constant 0 : index
    %226 = vector.load %arg2[%c1_243, %c2_244, %c0_245, %c0_246] : memref<2x8x16x16xf32, #tpu.memory_space<vmem>>, vector<1x1x1x16xf32>
    %227 = vector.shape_cast %226 : vector<1x1x1x16xf32> to vector<1x16xf32>
    %228 = vector.shape_cast %227 : vector<1x16xf32> to vector<1x16xf32>
    %229 = vector.broadcast %228 : vector<1x16xf32> to vector<4x16xf32>
    %c0_247 = arith.constant 0 : index
    %c0_248 = arith.constant 0 : index
    %230 = vector.load %arg4[%c0_247, %c0_248] : memref<24x16xf32, #tpu.memory_space<vmem>>, vector<4x16xf32>
    tpu.vector_store %arg4[%c0_247, %c0_248], %229 {strides = array<i32>} : memref<24x16xf32, #tpu.memory_space<vmem>>, vector<4x16xf32>,
    %c1_249 = arith.constant 1 : index
    %c2_250 = arith.constant 2 : index
    %c15_251 = arith.constant 15 : index
    %c0_252 = arith.constant 0 : index
    %231 = vector.load %arg2[%c1_249, %c2_250, %c15_251, %c0_252] : memref<2x8x16x16xf32, #tpu.memory_space<vmem>>, vector<1x1x1x16xf32>
    %232 = vector.shape_cast %231 : vector<1x1x1x16xf32> to vector<1x16xf32>
    %233 = vector.shape_cast %232 : vector<1x16xf32> to vector<1x16xf32>
    %234 = vector.broadcast %233 : vector<1x16xf32> to vector<4x16xf32>
    %c20_253 = arith.constant 20 : index
    %c0_254 = arith.constant 0 : index
    %235 = vector.load %arg4[%c20_253, %c0_254] : memref<24x16xf32, #tpu.memory_space<vmem>>, vector<4x16xf32>
    tpu.vector_store %arg4[%c20_253, %c0_254], %234 {strides = array<i32>} : memref<24x16xf32, #tpu.memory_space<vmem>>, vector<4x16xf32>,
    %236 = arith.index_cast %174 : i32 to index
    %c0_255 = arith.constant 0 : index
    %237 = vector.load %arg4[%236, %c0_255] : memref<24x16xf32, #tpu.memory_space<vmem>>, vector<16x16xf32>
    %cst_256 = arith.constant dense<0.000000e+00> : vector<16x16xf32>
    %238 = tpu.matmul %237, %184, %cst_256 {dimension_numbers = #tpu.dot_dimension_numbers<[1], [0], [0], [1], [0, 0, 1, 1], [], []>} : vector<16x16xf32>, vector<16x16xf32>, vector<16x16xf32> -> vector<16x16xf32>
    %c1_257 = arith.constant 1 : index
    %c2_258 = arith.constant 2 : index
    %c0_259 = arith.constant 0 : index
    %c0_260 = arith.constant 0 : index
    %239 = vector.load %arg3[%c1_257, %c2_258, %c0_259, %c0_260] : memref<2x8x16x16xf32, #tpu.memory_space<vmem>>, vector<1x1x16x16xf32>
    %240 = vector.shape_cast %239 : vector<1x1x16x16xf32> to vector<16x16xf32>
    %241 = vector.shape_cast %238 : vector<16x16xf32> to vector<1x1x16x16xf32>
    tpu.vector_store %arg3[%c1_257, %c2_258, %c0_259, %c0_260], %241 {strides = array<i32>} : memref<2x8x16x16xf32, #tpu.memory_space<vmem>>, vector<1x1x16x16xf32>,
    %c1_261 = arith.constant 1 : index
    %c3_262 = arith.constant 3 : index
    %c0_263 = arith.constant 0 : index
    %c0_264 = arith.constant 0 : index
    %242 = vector.load %arg2[%c1_261, %c3_262, %c0_263, %c0_264] : memref<2x8x16x16xf32, #tpu.memory_space<vmem>>, vector<1x1x16x16xf32>
    %243 = vector.shape_cast %242 : vector<1x1x16x16xf32> to vector<16x16xf32>
    %c4_265 = arith.constant 4 : index
    %c0_266 = arith.constant 0 : index
    %244 = vector.load %arg4[%c4_265, %c0_266] : memref<24x16xf32, #tpu.memory_space<vmem>>, vector<16x16xf32>
    tpu.vector_store %arg4[%c4_265, %c0_266], %243 {strides = array<i32>} : memref<24x16xf32, #tpu.memory_space<vmem>>, vector<16x16xf32>,
    %c1_267 = arith.constant 1 : index
    %c3_268 = arith.constant 3 : index
    %c0_269 = arith.constant 0 : index
    %c0_270 = arith.constant 0 : index
    %245 = vector.load %arg2[%c1_267, %c3_268, %c0_269, %c0_270] : memref<2x8x16x16xf32, #tpu.memory_space<vmem>>, vector<1x1x1x16xf32>
    %246 = vector.shape_cast %245 : vector<1x1x1x16xf32> to vector<1x16xf32>
    %247 = vector.shape_cast %246 : vector<1x16xf32> to vector<1x16xf32>
    %248 = vector.broadcast %247 : vector<1x16xf32> to vector<4x16xf32>
    %c0_271 = arith.constant 0 : index
    %c0_272 = arith.constant 0 : index
    %249 = vector.load %arg4[%c0_271, %c0_272] : memref<24x16xf32, #tpu.memory_space<vmem>>, vector<4x16xf32>
    tpu.vector_store %arg4[%c0_271, %c0_272], %248 {strides = array<i32>} : memref<24x16xf32, #tpu.memory_space<vmem>>, vector<4x16xf32>,
    %c1_273 = arith.constant 1 : index
    %c3_274 = arith.constant 3 : index
    %c15_275 = arith.constant 15 : index
    %c0_276 = arith.constant 0 : index
    %250 = vector.load %arg2[%c1_273, %c3_274, %c15_275, %c0_276] : memref<2x8x16x16xf32, #tpu.memory_space<vmem>>, vector<1x1x1x16xf32>
    %251 = vector.shape_cast %250 : vector<1x1x1x16xf32> to vector<1x16xf32>
    %252 = vector.shape_cast %251 : vector<1x16xf32> to vector<1x16xf32>
    %253 = vector.broadcast %252 : vector<1x16xf32> to vector<4x16xf32>
    %c20_277 = arith.constant 20 : index
    %c0_278 = arith.constant 0 : index
    %254 = vector.load %arg4[%c20_277, %c0_278] : memref<24x16xf32, #tpu.memory_space<vmem>>, vector<4x16xf32>
    tpu.vector_store %arg4[%c20_277, %c0_278], %253 {strides = array<i32>} : memref<24x16xf32, #tpu.memory_space<vmem>>, vector<4x16xf32>,
    %255 = arith.index_cast %174 : i32 to index
    %c0_279 = arith.constant 0 : index
    %256 = vector.load %arg4[%255, %c0_279] : memref<24x16xf32, #tpu.memory_space<vmem>>, vector<16x16xf32>
    %cst_280 = arith.constant dense<0.000000e+00> : vector<16x16xf32>
    %257 = tpu.matmul %256, %184, %cst_280 {dimension_numbers = #tpu.dot_dimension_numbers<[1], [0], [0], [1], [0, 0, 1, 1], [], []>} : vector<16x16xf32>, vector<16x16xf32>, vector<16x16xf32> -> vector<16x16xf32>
    %c1_281 = arith.constant 1 : index
    %c3_282 = arith.constant 3 : index
    %c0_283 = arith.constant 0 : index
    %c0_284 = arith.constant 0 : index
    %258 = vector.load %arg3[%c1_281, %c3_282, %c0_283, %c0_284] : memref<2x8x16x16xf32, #tpu.memory_space<vmem>>, vector<1x1x16x16xf32>
    %259 = vector.shape_cast %258 : vector<1x1x16x16xf32> to vector<16x16xf32>
    %260 = vector.shape_cast %257 : vector<16x16xf32> to vector<1x1x16x16xf32>
    tpu.vector_store %arg3[%c1_281, %c3_282, %c0_283, %c0_284], %260 {strides = array<i32>} : memref<2x8x16x16xf32, #tpu.memory_space<vmem>>, vector<1x1x16x16xf32>,
    %c1_285 = arith.constant 1 : index
    %c4_286 = arith.constant 4 : index
    %c0_287 = arith.constant 0 : index
    %c0_288 = arith.constant 0 : index
    %261 = vector.load %arg2[%c1_285, %c4_286, %c0_287, %c0_288] : memref<2x8x16x16xf32, #tpu.memory_space<vmem>>, vector<1x1x16x16xf32>
    %262 = vector.shape_cast %261 : vector<1x1x16x16xf32> to vector<16x16xf32>
    %c4_289 = arith.constant 4 : index
    %c0_290 = arith.constant 0 : index
    %263 = vector.load %arg4[%c4_289, %c0_290] : memref<24x16xf32, #tpu.memory_space<vmem>>, vector<16x16xf32>
    tpu.vector_store %arg4[%c4_289, %c0_290], %262 {strides = array<i32>} : memref<24x16xf32, #tpu.memory_space<vmem>>, vector<16x16xf32>,
    %c1_291 = arith.constant 1 : index
    %c4_292 = arith.constant 4 : index
    %c0_293 = arith.constant 0 : index
    %c0_294 = arith.constant 0 : index
    %264 = vector.load %arg2[%c1_291, %c4_292, %c0_293, %c0_294] : memref<2x8x16x16xf32, #tpu.memory_space<vmem>>, vector<1x1x1x16xf32>
    %265 = vector.shape_cast %264 : vector<1x1x1x16xf32> to vector<1x16xf32>
    %266 = vector.shape_cast %265 : vector<1x16xf32> to vector<1x16xf32>
    %267 = vector.broadcast %266 : vector<1x16xf32> to vector<4x16xf32>
    %c0_295 = arith.constant 0 : index
    %c0_296 = arith.constant 0 : index
    %268 = vector.load %arg4[%c0_295, %c0_296] : memref<24x16xf32, #tpu.memory_space<vmem>>, vector<4x16xf32>
    tpu.vector_store %arg4[%c0_295, %c0_296], %267 {strides = array<i32>} : memref<24x16xf32, #tpu.memory_space<vmem>>, vector<4x16xf32>,
    %c1_297 = arith.constant 1 : index
    %c4_298 = arith.constant 4 : index
    %c15_299 = arith.constant 15 : index
    %c0_300 = arith.constant 0 : index
    %269 = vector.load %arg2[%c1_297, %c4_298, %c15_299, %c0_300] : memref<2x8x16x16xf32, #tpu.memory_space<vmem>>, vector<1x1x1x16xf32>
    %270 = vector.shape_cast %269 : vector<1x1x1x16xf32> to vector<1x16xf32>
    %271 = vector.shape_cast %270 : vector<1x16xf32> to vector<1x16xf32>
    %272 = vector.broadcast %271 : vector<1x16xf32> to vector<4x16xf32>
    %c20_301 = arith.constant 20 : index
    %c0_302 = arith.constant 0 : index
    %273 = vector.load %arg4[%c20_301, %c0_302] : memref<24x16xf32, #tpu.memory_space<vmem>>, vector<4x16xf32>
    tpu.vector_store %arg4[%c20_301, %c0_302], %272 {strides = array<i32>} : memref<24x16xf32, #tpu.memory_space<vmem>>, vector<4x16xf32>,
    %274 = arith.index_cast %174 : i32 to index
    %c0_303 = arith.constant 0 : index
    %275 = vector.load %arg4[%274, %c0_303] : memref<24x16xf32, #tpu.memory_space<vmem>>, vector<16x16xf32>
    %cst_304 = arith.constant dense<0.000000e+00> : vector<16x16xf32>
    %276 = tpu.matmul %275, %184, %cst_304 {dimension_numbers = #tpu.dot_dimension_numbers<[1], [0], [0], [1], [0, 0, 1, 1], [], []>} : vector<16x16xf32>, vector<16x16xf32>, vector<16x16xf32> -> vector<16x16xf32>
    %c1_305 = arith.constant 1 : index
    %c4_306 = arith.constant 4 : index
    %c0_307 = arith.constant 0 : index
    %c0_308 = arith.constant 0 : index
    %277 = vector.load %arg3[%c1_305, %c4_306, %c0_307, %c0_308] : memref<2x8x16x16xf32, #tpu.memory_space<vmem>>, vector<1x1x16x16xf32>
    %278 = vector.shape_cast %277 : vector<1x1x16x16xf32> to vector<16x16xf32>
    %279 = vector.shape_cast %276 : vector<16x16xf32> to vector<1x1x16x16xf32>
    tpu.vector_store %arg3[%c1_305, %c4_306, %c0_307, %c0_308], %279 {strides = array<i32>} : memref<2x8x16x16xf32, #tpu.memory_space<vmem>>, vector<1x1x16x16xf32>,
    %c1_309 = arith.constant 1 : index
    %c5_310 = arith.constant 5 : index
    %c0_311 = arith.constant 0 : index
    %c0_312 = arith.constant 0 : index
    %280 = vector.load %arg2[%c1_309, %c5_310, %c0_311, %c0_312] : memref<2x8x16x16xf32, #tpu.memory_space<vmem>>, vector<1x1x16x16xf32>
    %281 = vector.shape_cast %280 : vector<1x1x16x16xf32> to vector<16x16xf32>
    %c4_313 = arith.constant 4 : index
    %c0_314 = arith.constant 0 : index
    %282 = vector.load %arg4[%c4_313, %c0_314] : memref<24x16xf32, #tpu.memory_space<vmem>>, vector<16x16xf32>
    tpu.vector_store %arg4[%c4_313, %c0_314], %281 {strides = array<i32>} : memref<24x16xf32, #tpu.memory_space<vmem>>, vector<16x16xf32>,
    %c1_315 = arith.constant 1 : index
    %c5_316 = arith.constant 5 : index
    %c0_317 = arith.constant 0 : index
    %c0_318 = arith.constant 0 : index
    %283 = vector.load %arg2[%c1_315, %c5_316, %c0_317, %c0_318] : memref<2x8x16x16xf32, #tpu.memory_space<vmem>>, vector<1x1x1x16xf32>
    %284 = vector.shape_cast %283 : vector<1x1x1x16xf32> to vector<1x16xf32>
    %285 = vector.shape_cast %284 : vector<1x16xf32> to vector<1x16xf32>
    %286 = vector.broadcast %285 : vector<1x16xf32> to vector<4x16xf32>
    %c0_319 = arith.constant 0 : index
    %c0_320 = arith.constant 0 : index
    %287 = vector.load %arg4[%c0_319, %c0_320] : memref<24x16xf32, #tpu.memory_space<vmem>>, vector<4x16xf32>
    tpu.vector_store %arg4[%c0_319, %c0_320], %286 {strides = array<i32>} : memref<24x16xf32, #tpu.memory_space<vmem>>, vector<4x16xf32>,
    %c1_321 = arith.constant 1 : index
    %c5_322 = arith.constant 5 : index
    %c15_323 = arith.constant 15 : index
    %c0_324 = arith.constant 0 : index
    %288 = vector.load %arg2[%c1_321, %c5_322, %c15_323, %c0_324] : memref<2x8x16x16xf32, #tpu.memory_space<vmem>>, vector<1x1x1x16xf32>
    %289 = vector.shape_cast %288 : vector<1x1x1x16xf32> to vector<1x16xf32>
    %290 = vector.shape_cast %289 : vector<1x16xf32> to vector<1x16xf32>
    %291 = vector.broadcast %290 : vector<1x16xf32> to vector<4x16xf32>
    %c20_325 = arith.constant 20 : index
    %c0_326 = arith.constant 0 : index
    %292 = vector.load %arg4[%c20_325, %c0_326] : memref<24x16xf32, #tpu.memory_space<vmem>>, vector<4x16xf32>
    tpu.vector_store %arg4[%c20_325, %c0_326], %291 {strides = array<i32>} : memref<24x16xf32, #tpu.memory_space<vmem>>, vector<4x16xf32>,
    %293 = arith.index_cast %174 : i32 to index
    %c0_327 = arith.constant 0 : index
    %294 = vector.load %arg4[%293, %c0_327] : memref<24x16xf32, #tpu.memory_space<vmem>>, vector<16x16xf32>
    %cst_328 = arith.constant dense<0.000000e+00> : vector<16x16xf32>
    %295 = tpu.matmul %294, %184, %cst_328 {dimension_numbers = #tpu.dot_dimension_numbers<[1], [0], [0], [1], [0, 0, 1, 1], [], []>} : vector<16x16xf32>, vector<16x16xf32>, vector<16x16xf32> -> vector<16x16xf32>
    %c1_329 = arith.constant 1 : index
    %c5_330 = arith.constant 5 : index
    %c0_331 = arith.constant 0 : index
    %c0_332 = arith.constant 0 : index
    %296 = vector.load %arg3[%c1_329, %c5_330, %c0_331, %c0_332] : memref<2x8x16x16xf32, #tpu.memory_space<vmem>>, vector<1x1x16x16xf32>
    %297 = vector.shape_cast %296 : vector<1x1x16x16xf32> to vector<16x16xf32>
    %298 = vector.shape_cast %295 : vector<16x16xf32> to vector<1x1x16x16xf32>
    tpu.vector_store %arg3[%c1_329, %c5_330, %c0_331, %c0_332], %298 {strides = array<i32>} : memref<2x8x16x16xf32, #tpu.memory_space<vmem>>, vector<1x1x16x16xf32>,
    %c1_333 = arith.constant 1 : index
    %c6_334 = arith.constant 6 : index
    %c0_335 = arith.constant 0 : index
    %c0_336 = arith.constant 0 : index
    %299 = vector.load %arg2[%c1_333, %c6_334, %c0_335, %c0_336] : memref<2x8x16x16xf32, #tpu.memory_space<vmem>>, vector<1x1x16x16xf32>
    %300 = vector.shape_cast %299 : vector<1x1x16x16xf32> to vector<16x16xf32>
    %c4_337 = arith.constant 4 : index
    %c0_338 = arith.constant 0 : index
    %301 = vector.load %arg4[%c4_337, %c0_338] : memref<24x16xf32, #tpu.memory_space<vmem>>, vector<16x16xf32>
    tpu.vector_store %arg4[%c4_337, %c0_338], %300 {strides = array<i32>} : memref<24x16xf32, #tpu.memory_space<vmem>>, vector<16x16xf32>,
    %c1_339 = arith.constant 1 : index
    %c6_340 = arith.constant 6 : index
    %c0_341 = arith.constant 0 : index
    %c0_342 = arith.constant 0 : index
    %302 = vector.load %arg2[%c1_339, %c6_340, %c0_341, %c0_342] : memref<2x8x16x16xf32, #tpu.memory_space<vmem>>, vector<1x1x1x16xf32>
    %303 = vector.shape_cast %302 : vector<1x1x1x16xf32> to vector<1x16xf32>
    %304 = vector.shape_cast %303 : vector<1x16xf32> to vector<1x16xf32>
    %305 = vector.broadcast %304 : vector<1x16xf32> to vector<4x16xf32>
    %c0_343 = arith.constant 0 : index
    %c0_344 = arith.constant 0 : index
    %306 = vector.load %arg4[%c0_343, %c0_344] : memref<24x16xf32, #tpu.memory_space<vmem>>, vector<4x16xf32>
    tpu.vector_store %arg4[%c0_343, %c0_344], %305 {strides = array<i32>} : memref<24x16xf32, #tpu.memory_space<vmem>>, vector<4x16xf32>,
    %c1_345 = arith.constant 1 : index
    %c6_346 = arith.constant 6 : index
    %c15_347 = arith.constant 15 : index
    %c0_348 = arith.constant 0 : index
    %307 = vector.load %arg2[%c1_345, %c6_346, %c15_347, %c0_348] : memref<2x8x16x16xf32, #tpu.memory_space<vmem>>, vector<1x1x1x16xf32>
    %308 = vector.shape_cast %307 : vector<1x1x1x16xf32> to vector<1x16xf32>
    %309 = vector.shape_cast %308 : vector<1x16xf32> to vector<1x16xf32>
    %310 = vector.broadcast %309 : vector<1x16xf32> to vector<4x16xf32>
    %c20_349 = arith.constant 20 : index
    %c0_350 = arith.constant 0 : index
    %311 = vector.load %arg4[%c20_349, %c0_350] : memref<24x16xf32, #tpu.memory_space<vmem>>, vector<4x16xf32>
    tpu.vector_store %arg4[%c20_349, %c0_350], %310 {strides = array<i32>} : memref<24x16xf32, #tpu.memory_space<vmem>>, vector<4x16xf32>,
    %312 = arith.index_cast %174 : i32 to index
    %c0_351 = arith.constant 0 : index
    %313 = vector.load %arg4[%312, %c0_351] : memref<24x16xf32, #tpu.memory_space<vmem>>, vector<16x16xf32>
    %cst_352 = arith.constant dense<0.000000e+00> : vector<16x16xf32>
    %314 = tpu.matmul %313, %184, %cst_352 {dimension_numbers = #tpu.dot_dimension_numbers<[1], [0], [0], [1], [0, 0, 1, 1], [], []>} : vector<16x16xf32>, vector<16x16xf32>, vector<16x16xf32> -> vector<16x16xf32>
    %c1_353 = arith.constant 1 : index
    %c6_354 = arith.constant 6 : index
    %c0_355 = arith.constant 0 : index
    %c0_356 = arith.constant 0 : index
    %315 = vector.load %arg3[%c1_353, %c6_354, %c0_355, %c0_356] : memref<2x8x16x16xf32, #tpu.memory_space<vmem>>, vector<1x1x16x16xf32>
    %316 = vector.shape_cast %315 : vector<1x1x16x16xf32> to vector<16x16xf32>
    %317 = vector.shape_cast %314 : vector<16x16xf32> to vector<1x1x16x16xf32>
    tpu.vector_store %arg3[%c1_353, %c6_354, %c0_355, %c0_356], %317 {strides = array<i32>} : memref<2x8x16x16xf32, #tpu.memory_space<vmem>>, vector<1x1x16x16xf32>,
    %c1_357 = arith.constant 1 : index
    %c7_358 = arith.constant 7 : index
    %c0_359 = arith.constant 0 : index
    %c0_360 = arith.constant 0 : index
    %318 = vector.load %arg2[%c1_357, %c7_358, %c0_359, %c0_360] : memref<2x8x16x16xf32, #tpu.memory_space<vmem>>, vector<1x1x16x16xf32>
    %319 = vector.shape_cast %318 : vector<1x1x16x16xf32> to vector<16x16xf32>
    %c4_361 = arith.constant 4 : index
    %c0_362 = arith.constant 0 : index
    %320 = vector.load %arg4[%c4_361, %c0_362] : memref<24x16xf32, #tpu.memory_space<vmem>>, vector<16x16xf32>
    tpu.vector_store %arg4[%c4_361, %c0_362], %319 {strides = array<i32>} : memref<24x16xf32, #tpu.memory_space<vmem>>, vector<16x16xf32>,
    %c1_363 = arith.constant 1 : index
    %c7_364 = arith.constant 7 : index
    %c0_365 = arith.constant 0 : index
    %c0_366 = arith.constant 0 : index
    %321 = vector.load %arg2[%c1_363, %c7_364, %c0_365, %c0_366] : memref<2x8x16x16xf32, #tpu.memory_space<vmem>>, vector<1x1x1x16xf32>
    %322 = vector.shape_cast %321 : vector<1x1x1x16xf32> to vector<1x16xf32>
    %323 = vector.shape_cast %322 : vector<1x16xf32> to vector<1x16xf32>
    %324 = vector.broadcast %323 : vector<1x16xf32> to vector<4x16xf32>
    %c0_367 = arith.constant 0 : index
    %c0_368 = arith.constant 0 : index
    %325 = vector.load %arg4[%c0_367, %c0_368] : memref<24x16xf32, #tpu.memory_space<vmem>>, vector<4x16xf32>
    tpu.vector_store %arg4[%c0_367, %c0_368], %324 {strides = array<i32>} : memref<24x16xf32, #tpu.memory_space<vmem>>, vector<4x16xf32>,
    %c1_369 = arith.constant 1 : index
    %c7_370 = arith.constant 7 : index
    %c15_371 = arith.constant 15 : index
    %c0_372 = arith.constant 0 : index
    %326 = vector.load %arg2[%c1_369, %c7_370, %c15_371, %c0_372] : memref<2x8x16x16xf32, #tpu.memory_space<vmem>>, vector<1x1x1x16xf32>
    %327 = vector.shape_cast %326 : vector<1x1x1x16xf32> to vector<1x16xf32>
    %328 = vector.shape_cast %327 : vector<1x16xf32> to vector<1x16xf32>
    %329 = vector.broadcast %328 : vector<1x16xf32> to vector<4x16xf32>
    %c20_373 = arith.constant 20 : index
    %c0_374 = arith.constant 0 : index
    %330 = vector.load %arg4[%c20_373, %c0_374] : memref<24x16xf32, #tpu.memory_space<vmem>>, vector<4x16xf32>
    tpu.vector_store %arg4[%c20_373, %c0_374], %329 {strides = array<i32>} : memref<24x16xf32, #tpu.memory_space<vmem>>, vector<4x16xf32>,
    %331 = arith.index_cast %174 : i32 to index
    %c0_375 = arith.constant 0 : index
    %332 = vector.load %arg4[%331, %c0_375] : memref<24x16xf32, #tpu.memory_space<vmem>>, vector<16x16xf32>
    %cst_376 = arith.constant dense<0.000000e+00> : vector<16x16xf32>
    %333 = tpu.matmul %332, %184, %cst_376 {dimension_numbers = #tpu.dot_dimension_numbers<[1], [0], [0], [1], [0, 0, 1, 1], [], []>} : vector<16x16xf32>, vector<16x16xf32>, vector<16x16xf32> -> vector<16x16xf32>
    %c1_377 = arith.constant 1 : index
    %c7_378 = arith.constant 7 : index
    %c0_379 = arith.constant 0 : index
    %c0_380 = arith.constant 0 : index
    %334 = vector.load %arg3[%c1_377, %c7_378, %c0_379, %c0_380] : memref<2x8x16x16xf32, #tpu.memory_space<vmem>>, vector<1x1x16x16xf32>
    %335 = vector.shape_cast %334 : vector<1x1x16x16xf32> to vector<16x16xf32>
    %336 = vector.shape_cast %333 : vector<16x16xf32> to vector<1x1x16x16xf32>
    tpu.vector_store %arg3[%c1_377, %c7_378, %c0_379, %c0_380], %336 {strides = array<i32>} : memref<2x8x16x16xf32, #tpu.memory_space<vmem>>, vector<1x1x16x16xf32>,
    return
  }
  func.func @transform_0(%arg0: i32, %arg1: memref<2x2xi32, #tpu.memory_space<smem>>) -> (i32, i32, i32, i32) {
    %c0_i32 = arith.constant 0 : i32
    %c0_i32_0 = arith.constant 0 : i32
    %c0_i32_1 = arith.constant 0 : i32
    %c0_i32_2 = arith.constant 0 : i32
    return %arg0, %c0_i32, %c0_i32_0, %c0_i32_1 : i32, i32, i32, i32
  }
  func.func @transform_1(%arg0: i32, %arg1: memref<2x2xi32, #tpu.memory_space<smem>>) -> (i32, i32, i32, i32) {
    %c0_i32 = arith.constant 0 : i32
    %c0_i32_0 = arith.constant 0 : i32
    %c0_i32_1 = arith.constant 0 : i32
    %c0_i32_2 = arith.constant 0 : i32
    return %arg0, %c0_i32, %c0_i32_0, %c0_i32_1 : i32, i32, i32, i32
  }
}

</mosaic_0001>

<bundles_post_ra>
// kernel: random_shifts_aug.1
= control target key start
LH: loop header
LB: loop body
LE: loop exit
PB: predicated region body
PF: predicated region fallthrough
CT: control target
= control target key end

     0   :  { %s2506_s0 = inlined_call_operand.vmem [shape: s32[2,2], index: 0, kind: input, shape index: {}]   ;;  %s2507_s1 = inlined_call_operand.hbm [shape: f32[2,8,16,16], index: 1, kind: input, shape index: {}]   ;;  %s2508_s2 = inlined_call_operand.hbm [shape: f32[2,8,16,16], index: 2, kind: output, shape index: {}]  }
   0x1   :  { %s7_s11 = sshll.u32 %s2506_s0, 4  ;;  %s8_s11 = int_to_ptr.vmem [resolvable:$true] %s7_s11 }
   0x2   :  { %s2027_s12 = scalar_lea.vmem %s8_s11, 32  ;;  %p2032_p1 = scmp.lt.s32.totalorder %s8_s11, %s8_s11 }
   0x3   :  { %p2028_p0 = scmp.ne.s32.totalorder %s8_s11, %s2027_s12  ;;  %p2033_p2 = scmp.lt.s32.totalorder %s2027_s12, %s2027_s12 }
   0x5   :  { %p2034_p3 = por %p2033_p2, %p2032_p1 }
   0x7   :  { %p2035_p4 = pnand %p2034_p3, %p2028_p0 }
   0x9   :  { %2038 = shalt.err (!%p2035_p4)  }
   0xa   :  { %s2085_s13 = smov [#allocation4]  }
   0xb   :  { %10 = dma.vmem_to_smem %s8_s11, 32, %s2085_s13, [#allocation3] }
   0xc   :  { %2079 = dma.done.wait [#allocation3], 32 }
   0xd   :  { %2080 = vsyncadd [#allocation3], 4294967264 }
   0xe   :  { %12 = sfence }
   0xf   :  { %13 = vsyncpa [#allocation6], 0 }
  0x10   :  { %14 = vsyncpa [#allocation7], 0  ;;  %s2086_s14 = smov [#allocation5]  }
  0x11   :  { %s20_s15 = sshll.u32 %s2086_s14, 4  ;;  %s21_s15 = int_to_ptr.vmem [resolvable:$true] %s20_s15 }
  0x12   :  { %s2047_s16 = scalar_lea.vmem %s21_s15, 4096  ;;  %p2052_p6 = scmp.lt.s32.totalorder %s21_s15, %s21_s15 }
  0x13   :  { %p2048_p5 = scmp.ne.s32.totalorder %s21_s15, %s2047_s16  ;;  %p2053_p7 = scmp.lt.s32.totalorder %s2047_s16, %s2047_s16 }
  0x15   :  { %p2054_p8 = por %p2053_p7, %p2052_p6 }
  0x17   :  { %p2055_p9 = pnand %p2054_p8, %p2048_p5 }
  0x19   :  { %2058 = shalt.err (!%p2055_p9)
}
  0x1a   :  { %s2087_s0 = smov 128   ;;  %s2088_s17 = smov 8  }
  0x1b   :  { %26 = dma.hbm_to_vmem [thread:$0]  %s2507_s1, 4096, %s21_s15, [#allocation6], %s2087_s0, %s2087_s0, %s2088_s17  }
  0x1c   :  { %2081 = dma.done.wait [#allocation6], 4096  }
  0x1d   :  { %2082 = vsyncadd [#allocation6], 4294963200  ;;  %v31_v0 = vlaneseq  ;;  %s37_s20 = sld [smem:[#allocation4]]  ;;  %vm55_vm0 = vcmask 130048   ;;  %vm63_vm1 = vcmask 125952   ;;  %v53_v3 = vld [vmem:[#allocation5] sm:$0xff] }
  0x1e   :  { %s1740_s21 = sld [smem:[#allocation4 + $0x1]]  ;;  %v54_v4 = vld [vmem:[#allocation5 + $0x8] sm:$0xff]  ;;  %v1744_v5 = vld [vmem:[#allocation5] ss:$0 sm:$0xff]  ;;  %56 = vst.msk [vmem:[#allocation2 + $0x4] sm:$0xff] %vm55_vm0, %v53_v3  ;;  %v158_v11 = vld [vmem:[#allocation5 + $0x10] sm:$0xff] }
  0x1f   :  { %v2115_v1 = vand.u32 127, %v31_v0  ;;  %v2117_v2 = vshrl.u32 %v31_v0, 7  ;;  %57 = vst.msk [vmem:[#allocation2 + $0xc] sm:$0xff] %vm55_vm0, %v54_v4  ;;  %v1745_v7 = vld [vmem:[#allocation5 + $0xf] ss:$0 sm:$0xff]  ;;  %v159_v13 = vld [vmem:[#allocation5 + $0x18] sm:$0xff] }
  0x20   :  { %64 = vst.msk [vmem:[#allocation2] sm:$0xf] %vm63_vm1, %v1744_v5  ;;  %70 = vst.msk [vmem:[#allocation2 + $0x14] sm:$0xf] %vm63_vm1, %v1745_v7  ;;  %v1750_v14 = vld [vmem:[#allocation5 + $0x10] ss:$0 sm:$0xff] }
  0x21   :  { %v2125_v9 = vadd.s32 8, %v2117_v2  ;;  %v1751_v15 = vld [vmem:[#allocation5 + $0x1f] ss:$0 sm:$0xff]  ;;  %v2089_v18 = vmov 1.0   ;;  %v261_v21 = vld [vmem:[#allocation5 + $0x20] sm:$0xff]  ;;  %s1792_s23 = sld [smem:[#allocation4 + $0x80]] }
  0x22   :  { %v262_v22 = vld [vmem:[#allocation5 + $0x28] sm:$0xff]  ;;  %v1756_v23 = vld [vmem:[#allocation5 + $0x20] ss:$0 sm:$0xff]  ;;  %v364_v27 = vld [vmem:[#allocation5 + $0x30] sm:$0xff]  ;;  %s1793_s25 = sld [smem:[#allocation4 + $0x81]]  ;;  %s2090_s27 = smov [#allocation8]  }
  0x23   :  { %s1741_s22 = sadd.s32 4294967292, %s37_s20  ;;  %v1757_v24 = vld [vmem:[#allocation5 + $0x2f] ss:$0 sm:$0xff]  ;;  %v365_v28 = vld [vmem:[#allocation5 + $0x38] sm:$0xff]  ;;  %v1762_v29 = vld [vmem:[#allocation5 + $0x30] ss:$0 sm:$0xff] }
  0x24   :  { %v41_v6 = vstv %s1741_s22  ;;  %s2143_s1 = scalar_lea.vmem [#allocation2], %s1740_s21  ;;  %v1763_v30 = vld [vmem:[#allocation5 + $0x3f] ss:$0 sm:$0xff]  ;;  %v467_v35 = vld [vmem:[#allocation5 + $0x40] sm:$0xff]  ;;  %v468_v36 = vld [vmem:[#allocation5 + $0x48] sm:$0xff]  ;;  %s1726_s28 = sshll.u32 %s2090_s27, 4  ;;  %s1727_s28 = int_to_ptr.vmem [resolvable:$true] %s1726_s28 }
  0x25   :  { %v42_v8 = vadd.s32 %v41_v6, %v2115_v1  ;;  %v1768_v37 = vld [vmem:[#allocation5 + $0x40] ss:$0 sm:$0xff]  ;;  %v1769_v38 = vld [vmem:[#allocation5 + $0x4f] ss:$0 sm:$0xff]  ;;  %v570_v42 = vld [vmem:[#allocation5 + $0x50] sm:$0xff]  ;;  %s2059_s29 = scalar_lea.vmem %s1727_s28, 4096  ;;  %p2064_p11 = scmp.lt.s32.totalorder %s1727_s28, %s1727_s28 }
  0x26   :  { %v571_v43 = vld [vmem:[#allocation5 + $0x58] sm:$0xff]  ;;  %v1774_v44 = vld [vmem:[#allocation5 + $0x50] ss:$0 sm:$0xff]  ;;  %v673_v50 = vld [vmem:[#allocation5 + $0x60] sm:$0xff]  ;;  %p2060_p10 = scmp.ne.s32.totalorder %s1727_s28, %s2059_s29  ;;  %p2065_p12 = scmp.lt.s32.totalorder %s2059_s29, %s2059_s29 }
  0x27   :  { %vm43_vm2 = vcmp.gt.s32.totalorder %v42_v8, 0  ;;  %v72_v19 = vld [vmem:[%s2143_s1] sm:$0xff]  ;;  %v73_v20 = vld [vmem:[%s2143_s1 + $0x8] sm:$0xff]  ;;  %s1794_s24 = sadd.s32 4294967292, %s1792_s23  ;;  %v1775_v45 = vld [vmem:[#allocation5 + $0x5f] ss:$0 sm:$0xff] }
  0x28   :  { %v44_v10 = vsel %vm43_vm2, %v42_v8, 0  ;;  %160 = vst.msk [vmem:[#allocation2 + $0x4] sm:$0xff] %vm55_vm0, %v158_v11  ;;  %161 = vst.msk [vmem:[#allocation2 + $0xc] sm:$0xff] %vm55_vm0, %v159_v13  ;;  %1913 = vmatprep.mubr.msk.f32.mxu0 %vm55_vm0, %v72_v19  ;;  %v884_v33 = vstv %s1794_s24  ;;  %v674_v51 = vld [vmem:[#allocation5 + $0x68] sm:$0xff]  ;;  %v1780_v52 = vld [vmem:[#allocation5 + $0x60] ss:$0 sm:$0xff]  ;;  %p2066_p13 = por %p2065_p12, %p2064_p11 }
  0x29   :  { %vm45_vm3 = vcmp.lt.s32.totalorder %v44_v10, 15  ;;  %167 = vst.msk [vmem:[#allocation2] sm:$0xf] %vm63_vm1, %v1750_v14  ;;  %173 = vst.msk [vmem:[#allocation2 + $0x14] sm:$0xf] %vm63_vm1, %v1751_v15  ;;  %v885_v34 = vadd.s32 %v884_v33, %v2115_v1  ;;  %v776_v56 = vld [vmem:[#allocation5 + $0x70] sm:$0xff] }
  0x2a   :  { %v46_v12 = vsel %vm45_vm3, %v44_v10, 15  ;;  %v1781_v53 = vld [vmem:[#allocation5 + $0x6f] ss:$0 sm:$0xff]  ;;  %v777_v57 = vld [vmem:[#allocation5 + $0x78] sm:$0xff]  ;;  %v1786_v58 = vld [vmem:[#allocation5 + $0x70] ss:$0 sm:$0xff]  ;;  %p2067_p0 = pnand %p2066_p13, %p2060_p10 }
  0x2b   :  { %vm2128_vm4 = vcmp.eq.s32.totalorder %v2125_v9, %v46_v12  ;;  %vm2133_vm5 = vcmp.eq.s32.totalorder %v2117_v2, %v46_v12  ;;  %vm886_vm6 = vcmp.gt.s32.totalorder %v885_v34, 0  ;;  %v1787_v59 = vld [vmem:[#allocation5 + $0x7f] ss:$0 sm:$0xff]  ;;  %v897_v63 = vld [vmem:[#allocation5 + $0x80] sm:$0xff]  ;;  %v898_v0 = vld [vmem:[#allocation5 + $0x88] sm:$0xff]  ;;  %s2340_s26 = scalar_lea.vmem [#allocation2], %s1793_s25 }
  0x2c   :  { %1909 = vmatprep.subr.msk.mxu0 %vm2128_vm4, %v2089_v18  ;;  %1916 = vmatprep.subr.msk.mxu1 %vm2128_vm4, %v2089_v18  ;;  %v887_v41 = vsel %vm886_vm6, %v885_v34, 0  ;;  %v1797_v1 = vld [vmem:[#allocation5 + $0x80] ss:$0 sm:$0xff]  ;;  %v1001_v5 = vld [vmem:[#allocation5 + $0x90] sm:$0xff]  ;;  %v1002_v6 = vld [vmem:[#allocation5 + $0x98] sm:$0xff] }
  0x2d   :  { %1910 = vmatpush3.msk.msra.mxu0 %vm2128_vm4, %v2089_v18  ;;  %1917 = vmatpush3.msk.msra.mxu1 %vm2128_vm4, %v2089_v18  ;;  %vm888_vm7 = vcmp.lt.s32.totalorder %v887_v41, 15  ;;  %v1803_v7 = vld [vmem:[#allocation5 + $0x90] ss:$0 sm:$0xff]  ;;  %v1804_v8 = vld [vmem:[#allocation5 + $0x9f] ss:$0 sm:$0xff]  ;;  %v1104_v11 = vld [vmem:[#allocation5 + $0xa0] sm:$0xff] }
  0x2e   :  { %1911 = vmatprep.subr.msk.mxu0 %vm2133_vm5, %v2089_v18  ;;  %1918 = vmatprep.subr.msk.mxu1 %vm2133_vm5, %v2089_v18  ;;  %v889_v48 = vsel %vm888_vm7, %v887_v41, 15  ;;  %v1105_v12 = vld [vmem:[#allocation5 + $0xa8] sm:$0xff]  ;;  %v1809_v13 = vld [vmem:[#allocation5 + $0xa0] ss:$0 sm:$0xff]  ;;  %v1207_v17 = vld [vmem:[#allocation5 + $0xb0] sm:$0xff] }
  0x2f   :  { %1912 = vmatpush3.msk.msra.mxu0 %vm2133_vm5, %v2089_v18  ;;  %1919 = vmatpush3.msk.msra.mxu1 %vm2133_vm5, %v2089_v18  ;;  %vm2262_vm8 = vcmp.eq.s32.totalorder %v2125_v9, %v889_v48  ;;  %vm2303_vm9 = vcmp.eq.s32.totalorder %v2117_v2, %v889_v48  ;;  %v1798_v2 = vld [vmem:[#allocation5 + $0x8f] ss:$0 sm:$0xff]  ;;  %v1208_v19 = vld [vmem:[#allocation5 + $0xb8] sm:$0xff] }
  0x30   :  { %1914 = vmatmul.mubr.msk.f32.vlgmr.msra.gmra.mxu0 %vm55_vm0, %v73_v20  ;;  %1923 = vmatprep.subr.msk.mxu0 %vm2128_vm4, %v2089_v18  ;;  %v174_v25 = vld [vmem:[%s2143_s1] sm:$0xff]  ;;  %v175_v26 = vld [vmem:[%s2143_s1 + $0x8] sm:$0xff]  ;;  %v1828_v33 = vld [vmem:[#allocation5 + $0xdf] ss:$0 sm:$0xff] }
  0x31   :  { %1930 = vmatprep.subr.msk.mxu1 %vm2128_vm4, %v2089_v18  ;;  %1924 = vmatpush3.msk.msra.mxu0 %vm2128_vm4, %v2089_v18  ;;  %263 = vst.msk [vmem:[#allocation2 + $0x4] sm:$0xff] %vm55_vm0, %v261_v21  ;;  %264 = vst.msk [vmem:[#allocation2 + $0xc] sm:$0xff] %vm55_vm0, %v262_v22  ;;  %v1810_v14 = vld [vmem:[#allocation5 + $0xaf] ss:$0 sm:$0xff]  ;;  %v1815_v20 = vld [vmem:[#allocation5 + $0xb0] ss:$0 sm:$0xff] }
  0x32   :  { %1925 = vmatprep.subr.msk.mxu0 %vm2133_vm5, %v2089_v18  ;;  %1920 = vmatprep.mubr.msk.f32.mxu1 %vm55_vm0, %v174_v25  ;;  %270 = vst.msk [vmem:[#allocation2] sm:$0xf] %vm63_vm1, %v1756_v23  ;;  %276 = vst.msk [vmem:[#allocation2 + $0x14] sm:$0xf] %vm63_vm1, %v1757_v24  ;;  %v1816_v21 = vld [vmem:[#allocation5 + $0xbf] ss:$0 sm:$0xff] }
  0x33   :  { %1926 = vmatpush3.msk.msra.mxu0 %vm2133_vm5, %v2089_v18  ;;  %1921 = vmatmul.mubr.msk.f32.vlgmr.msra.gmra.mxu1 %vm55_vm0, %v175_v26  ;;  %v1310_v24 = vld [vmem:[#allocation5 + $0xc0] sm:$0xff]  ;;  %v1311_v25 = vld [vmem:[#allocation5 + $0xc8] sm:$0xff] }
  0x34   :  { %1937 = vmatprep.subr.msk.mxu0 %vm2128_vm4, %v2089_v18  ;;  %1931 = vmatpush3.msk.msra.mxu1 %vm2128_vm4, %v2089_v18  ;;  %v1821_v26 = vld [vmem:[#allocation5 + $0xc0] ss:$0 sm:$0xff] }
  0x35   :  { %1932 = vmatprep.subr.msk.mxu1 %vm2133_vm5, %v2089_v18 }
  0x36   :  { %1933 = vmatpush3.msk.msra.mxu1 %vm2133_vm5, %v2089_v18 }
  0x37   :  { %1944 = vmatprep.subr.msk.mxu1 %vm2128_vm4, %v2089_v18 }
  0x39   :  { %v277_v31 = vld [vmem:[%s2143_s1] sm:$0xff]  ;;  %v278_v32 = vld [vmem:[%s2143_s1 + $0x8] sm:$0xff] }
  0x3a   :  { %1927 = vmatprep.mubr.msk.f32.mxu0 %vm55_vm0, %v277_v31  ;;  %366 = vst.msk [vmem:[#allocation2 + $0x4] sm:$0xff] %vm55_vm0, %v364_v27  ;;  %367 = vst.msk [vmem:[#allocation2 + $0xc] sm:$0xff] %vm55_vm0, %v365_v28  ;;  %v1822_v27 = vld [vmem:[#allocation5 + $0xcf] ss:$0 sm:$0xff]  ;;  %v1414_v31 = vld [vmem:[#allocation5 + $0xd8] sm:$0xff] }
  0x3b   :  { %373 = vst.msk [vmem:[#allocation2] sm:$0xf] %vm63_vm1, %v1762_v29  ;;  %379 = vst.msk [vmem:[#allocation2 + $0x14] sm:$0xf] %vm63_vm1, %v1763_v30  ;;  %1928 = vmatmul.mubr.msk.f32.vlgmr.msra.gmra.mxu0 %vm55_vm0, %v278_v32  ;;  %v1413_v30 = vld [vmem:[#allocation5 + $0xd0] sm:$0xff] }
  0x3c   :  { %1938 = vmatpush3.msk.msra.mxu0 %vm2128_vm4, %v2089_v18  ;;  %v1827_v32 = vld [vmem:[#allocation5 + $0xd0] ss:$0 sm:$0xff] }
  0x3d   :  { %1939 = vmatprep.subr.msk.mxu0 %vm2133_vm5, %v2089_v18 }
  0x3e   :  { %1940 = vmatpush3.msk.msra.mxu0 %vm2133_vm5, %v2089_v18 }
  0x3f   :  { %1951 = vmatprep.subr.msk.mxu0 %vm2128_vm4, %v2089_v18 }
  0x42   :  { %v380_v39 = vld [vmem:[%s2143_s1] sm:$0xff]  ;;  %v381_v40 = vld [vmem:[%s2143_s1 + $0x8] sm:$0xff] }
  0x43   :  { %1934 = vmatprep.mubr.msk.f32.mxu1 %vm55_vm0, %v380_v39  ;;  %469 = vst.msk [vmem:[#allocation2 + $0x4] sm:$0xff] %vm55_vm0, %v467_v35  ;;  %470 = vst.msk [vmem:[#allocation2 + $0xc] sm:$0xff] %vm55_vm0, %v468_v36  ;;  %v1516_v36 = vld [vmem:[#allocation5 + $0xe0] sm:$0xff]  ;;  %v1834_v39 = vld [vmem:[#allocation5 + $0xef] ss:$0 sm:$0xff] }
  0x44   :  { %476 = vst.msk [vmem:[#allocation2] sm:$0xf] %vm63_vm1, %v1768_v37  ;;  %482 = vst.msk [vmem:[#allocation2 + $0x14] sm:$0xf] %vm63_vm1, %v1769_v38  ;;  %1935 = vmatmul.mubr.msk.f32.vlgmr.msra.gmra.mxu1 %vm55_vm0, %v381_v40  ;;  %v1517_v37 = vld [vmem:[#allocation5 + $0xe8] sm:$0xff] }
  0x45   :  { %1945 = vmatpush3.msk.msra.mxu1 %vm2128_vm4, %v2089_v18  ;;  %v1833_v38 = vld [vmem:[#allocation5 + $0xe0] ss:$0 sm:$0xff] }
  0x46   :  { %1946 = vmatprep.subr.msk.mxu1 %vm2133_vm5, %v2089_v18 }
  0x47   :  { %1947 = vmatpush3.msk.msra.mxu1 %vm2133_vm5, %v2089_v18 }
  0x48   :  { %1958 = vmatprep.subr.msk.mxu1 %vm2128_vm4, %v2089_v18 }
  0x4b   :  { %v483_v46 = vld [vmem:[%s2143_s1] sm:$0xff]  ;;  %v484_v47 = vld [vmem:[%s2143_s1 + $0x8] sm:$0xff] }
  0x4c   :  { %1941 = vmatprep.mubr.msk.f32.mxu0 %vm55_vm0, %v483_v46  ;;  %572 = vst.msk [vmem:[#allocation2 + $0x4] sm:$0xff] %vm55_vm0, %v570_v42  ;;  %573 = vst.msk [vmem:[#allocation2 + $0xc] sm:$0xff] %vm55_vm0, %v571_v43  ;;  %v1619_v42 = vld [vmem:[#allocation5 + $0xf0] sm:$0xff]  ;;  %v1620_v43 = vld [vmem:[#allocation5 + $0xf8] sm:$0xff] }
  0x4d   :  { %579 = vst.msk [vmem:[#allocation2] sm:$0xf] %vm63_vm1, %v1774_v44  ;;  %585 = vst.msk [vmem:[#allocation2 + $0x14] sm:$0xf] %vm63_vm1, %v1775_v45  ;;  %1942 = vmatmul.mubr.msk.f32.vlgmr.msra.gmra.mxu0 %vm55_vm0, %v484_v47  ;;  %v1839_v44 = vld [vmem:[#allocation5 + $0xf0] ss:$0 sm:$0xff] }
  0x4e   :  { %1952 = vmatpush3.msk.msra.mxu0 %vm2128_vm4, %v2089_v18  ;;  %v1840_v45 = vld [vmem:[#allocation5 + $0xff] ss:$0 sm:$0xff] }
  0x4f   :  { %1953 = vmatprep.subr.msk.mxu0 %vm2133_vm5, %v2089_v18 }
  0x50   :  { %1954 = vmatpush3.msk.msra.mxu0 %vm2133_vm5, %v2089_v18 }
  0x51   :  { %1965 = vmatprep.subr.msk.mxu0 %vm2262_vm8, %v2089_v18 }
  0x54   :  { %v586_v54 = vld [vmem:[%s2143_s1] sm:$0xff]  ;;  %v587_v55 = vld [vmem:[%s2143_s1 + $0x8] sm:$0xff] }
  0x55   :  { %1948 = vmatprep.mubr.msk.f32.mxu1 %vm55_vm0, %v586_v54  ;;  %675 = vst.msk [vmem:[#allocation2 + $0x4] sm:$0xff] %vm55_vm0, %v673_v50  ;;  %676 = vst.msk [vmem:[#allocation2 + $0xc] sm:$0xff] %vm55_vm0, %v674_v51 }
  0x56   :  { %682 = vst.msk [vmem:[#allocation2] sm:$0xf] %vm63_vm1, %v1780_v52  ;;  %688 = vst.msk [vmem:[#allocation2 + $0x14] sm:$0xf] %vm63_vm1, %v1781_v53  ;;  %1949 = vmatmul.mubr.msk.f32.vlgmr.msra.gmra.mxu1 %vm55_vm0, %v587_v55 }
  0x57   :  { %1959 = vmatpush3.msk.msra.mxu1 %vm2128_vm4, %v2089_v18 }
  0x58   :  { %1960 = vmatprep.subr.msk.mxu1 %vm2133_vm5, %v2089_v18 }
  0x59   :  { %1961 = vmatpush3.msk.msra.mxu1 %vm2133_vm5, %v2089_v18 }
  0x5a   :  { %1972 = vmatprep.subr.msk.mxu1 %vm2262_vm8, %v2089_v18 }
  0x5d   :  { %v689_v60 = vld [vmem:[%s2143_s1] sm:$0xff]  ;;  %v690_v61 = vld [vmem:[%s2143_s1 + $0x8] sm:$0xff] }
  0x5e   :  { %1955 = vmatprep.mubr.msk.f32.mxu0 %vm55_vm0, %v689_v60  ;;  %778 = vst.msk [vmem:[#allocation2 + $0x4] sm:$0xff] %vm55_vm0, %v776_v56  ;;  %779 = vst.msk [vmem:[#allocation2 + $0xc] sm:$0xff] %vm55_vm0, %v777_v57 }
  0x5f   :  { %785 = vst.msk [vmem:[#allocation2] sm:$0xf] %vm63_vm1, %v1786_v58  ;;  %791 = vst.msk [vmem:[#allocation2 + $0x14] sm:$0xf] %vm63_vm1, %v1787_v59  ;;  %1956 = vmatmul.mubr.msk.f32.vlgmr.msra.gmra.mxu0 %vm55_vm0, %v690_v61 }
  0x60   :  { %1966 = vmatpush3.msk.msra.mxu0 %vm2262_vm8, %v2089_v18 }
  0x61   :  { %1967 = vmatprep.subr.msk.mxu0 %vm2303_vm9, %v2089_v18 }
  0x62   :  { %1968 = vmatpush3.msk.msra.mxu0 %vm2303_vm9, %v2089_v18 }
  0x63   :  { %1979 = vmatprep.subr.msk.mxu0 %vm2262_vm8, %v2089_v18 }
  0x66   :  { %v792_v3 = vld [vmem:[%s2143_s1] sm:$0xff]  ;;  %v793_v4 = vld [vmem:[%s2143_s1 + $0x8] sm:$0xff] }
  0x67   :  { %1962 = vmatprep.mubr.msk.f32.mxu1 %vm55_vm0, %v792_v3  ;;  %899 = vst.msk [vmem:[#allocation2 + $0x4] sm:$0xff] %vm55_vm0, %v897_v63  ;;  %900 = vst.msk [vmem:[#allocation2 + $0xc] sm:$0xff] %vm55_vm0, %v898_v0 }
  0x68   :  { %906 = vst.msk [vmem:[#allocation2] sm:$0xf] %vm63_vm1, %v1797_v1  ;;  %912 = vst.msk [vmem:[#allocation2 + $0x14] sm:$0xf] %vm63_vm1, %v1798_v2  ;;  %1963 = vmatmul.mubr.msk.f32.vlgmr.msra.gmra.mxu1 %vm55_vm0, %v793_v4 }
  0x69   :  { %1973 = vmatpush3.msk.msra.mxu1 %vm2262_vm8, %v2089_v18 }
  0x6a   :  { %1974 = vmatprep.subr.msk.mxu1 %vm2303_vm9, %v2089_v18 }
  0x6b   :  { %1975 = vmatpush3.msk.msra.mxu1 %vm2303_vm9, %v2089_v18 }
  0x6c   :  { %1986 = vmatprep.subr.msk.mxu1 %vm2262_vm8, %v2089_v18 }
  0x6f   :  { %v914_v9 = vld [vmem:[%s2340_s26] sm:$0xff]  ;;  %v915_v10 = vld [vmem:[%s2340_s26 + $0x8] sm:$0xff] }
  0x70   :  { %1969 = vmatprep.mubr.msk.f32.mxu0 %vm55_vm0, %v914_v9  ;;  %1003 = vst.msk [vmem:[#allocation2 + $0x4] sm:$0xff] %vm55_vm0, %v1001_v5  ;;  %1004 = vst.msk [vmem:[#allocation2 + $0xc] sm:$0xff] %vm55_vm0, %v1002_v6 }
  0x71   :  { %1010 = vst.msk [vmem:[#allocation2] sm:$0xf] %vm63_vm1, %v1803_v7  ;;  %1016 = vst.msk [vmem:[#allocation2 + $0x14] sm:$0xf] %vm63_vm1, %v1804_v8  ;;  %1970 = vmatmul.mubr.msk.f32.vlgmr.msra.gmra.mxu0 %vm55_vm0, %v915_v10 }
  0x72   :  { %1980 = vmatpush3.msk.msra.mxu0 %vm2262_vm8, %v2089_v18 }
  0x73   :  { %1981 = vmatprep.subr.msk.mxu0 %vm2303_vm9, %v2089_v18 }
  0x74   :  { %1982 = vmatpush3.msk.msra.mxu0 %vm2303_vm9, %v2089_v18 }
  0x75   :  { %1993 = vmatprep.subr.msk.mxu0 %vm2262_vm8, %v2089_v18 }
  0x78   :  { %v1017_v15 = vld [vmem:[%s2340_s26] sm:$0xff]  ;;  %v1018_v16 = vld [vmem:[%s2340_s26 + $0x8] sm:$0xff] }
  0x79   :  { %1976 = vmatprep.mubr.msk.f32.mxu1 %vm55_vm0, %v1017_v15  ;;  %1106 = vst.msk [vmem:[#allocation2 + $0x4] sm:$0xff] %vm55_vm0, %v1104_v11  ;;  %1107 = vst.msk [vmem:[#allocation2 + $0xc] sm:$0xff] %vm55_vm0, %v1105_v12 }
  0x7a   :  { %1113 = vst.msk [vmem:[#allocation2] sm:$0xf] %vm63_vm1, %v1809_v13  ;;  %1119 = vst.msk [vmem:[#allocation2 + $0x14] sm:$0xf] %vm63_vm1, %v1810_v14  ;;  %1977 = vmatmul.mubr.msk.f32.vlgmr.msra.gmra.mxu1 %vm55_vm0, %v1018_v16 }
  0x7b   :  { %1987 = vmatpush3.msk.msra.mxu1 %vm2262_vm8, %v2089_v18 }
  0x7c   :  { %1988 = vmatprep.subr.msk.mxu1 %vm2303_vm9, %v2089_v18 }
  0x7d   :  { %1989 = vmatpush3.msk.msra.mxu1 %vm2303_vm9, %v2089_v18 }
  0x7e   :  { %2000 = vmatprep.subr.msk.mxu1 %vm2262_vm8, %v2089_v18 }
  0x81   :  { %v1120_v22 = vld [vmem:[%s2340_s26] sm:$0xff]  ;;  %v1121_v23 = vld [vmem:[%s2340_s26 + $0x8] sm:$0xff] }
  0x82   :  { %1983 = vmatprep.mubr.msk.f32.mxu0 %vm55_vm0, %v1120_v22  ;;  %1209 = vst.msk [vmem:[#allocation2 + $0x4] sm:$0xff] %vm55_vm0, %v1207_v17  ;;  %1210 = vst.msk [vmem:[#allocation2 + $0xc] sm:$0xff] %vm55_vm0, %v1208_v19 }
  0x83   :  { %1216 = vst.msk [vmem:[#allocation2] sm:$0xf] %vm63_vm1, %v1815_v20  ;;  %1222 = vst.msk [vmem:[#allocation2 + $0x14] sm:$0xf] %vm63_vm1, %v1816_v21  ;;  %1984 = vmatmul.mubr.msk.f32.vlgmr.msra.gmra.mxu0 %vm55_vm0, %v1121_v23 }
  0x84   :  { %1994 = vmatpush3.msk.msra.mxu0 %vm2262_vm8, %v2089_v18 }
  0x85   :  { %1995 = vmatprep.subr.msk.mxu0 %vm2303_vm9, %v2089_v18 }
  0x86   :  { %1996 = vmatpush3.msk.msra.mxu0 %vm2303_vm9, %v2089_v18 }
  0x87   :  { %2007 = vmatprep.subr.msk.mxu0 %vm2262_vm8, %v2089_v18 }
  0x8a   :  { %v1223_v28 = vld [vmem:[%s2340_s26] sm:$0xff]  ;;  %v1224_v29 = vld [vmem:[%s2340_s26 + $0x8] sm:$0xff] }
  0x8b   :  { %1990 = vmatprep.mubr.msk.f32.mxu1 %vm55_vm0, %v1223_v28  ;;  %1312 = vst.msk [vmem:[#allocation2 + $0x4] sm:$0xff] %vm55_vm0, %v1310_v24  ;;  %1313 = vst.msk [vmem:[#allocation2 + $0xc] sm:$0xff] %vm55_vm0, %v1311_v25 }
  0x8c   :  { %1319 = vst.msk [vmem:[#allocation2] sm:$0xf] %vm63_vm1, %v1821_v26  ;;  %1325 = vst.msk [vmem:[#allocation2 + $0x14] sm:$0xf] %vm63_vm1, %v1822_v27  ;;  %1991 = vmatmul.mubr.msk.f32.vlgmr.msra.gmra.mxu1 %vm55_vm0, %v1224_v29 }
  0x8d   :  { %2001 = vmatpush3.msk.msra.mxu1 %vm2262_vm8, %v2089_v18 }
  0x8e   :  { %2002 = vmatprep.subr.msk.mxu1 %vm2303_vm9, %v2089_v18 }
  0x8f   :  { %2003 = vmatpush3.msk.msra.mxu1 %vm2303_vm9, %v2089_v18 }
  0x90   :  { %2014 = vmatprep.subr.msk.mxu1 %vm2262_vm8, %v2089_v18 }
  0x93   :  { %v1326_v34 = vld [vmem:[%s2340_s26] sm:$0xff]  ;;  %v1327_v35 = vld [vmem:[%s2340_s26 + $0x8] sm:$0xff] }
  0x94   :  { %1997 = vmatprep.mubr.msk.f32.mxu0 %vm55_vm0, %v1326_v34  ;;  %1415 = vst.msk [vmem:[#allocation2 + $0x4] sm:$0xff] %vm55_vm0, %v1413_v30  ;;  %1416 = vst.msk [vmem:[#allocation2 + $0xc] sm:$0xff] %vm55_vm0, %v1414_v31 }
  0x95   :  { %1422 = vst.msk [vmem:[#allocation2] sm:$0xf] %vm63_vm1, %v1827_v32  ;;  %1428 = vst.msk [vmem:[#allocation2 + $0x14] sm:$0xf] %vm63_vm1, %v1828_v33  ;;  %1998 = vmatmul.mubr.msk.f32.vlgmr.msra.gmra.mxu0 %vm55_vm0, %v1327_v35 }
  0x96   :  { %2008 = vmatpush3.msk.msra.mxu0 %vm2262_vm8, %v2089_v18 }
  0x97   :  { %2009 = vmatprep.subr.msk.mxu0 %vm2303_vm9, %v2089_v18 }
  0x98   :  { %2010 = vmatpush3.msk.msra.mxu0 %vm2303_vm9, %v2089_v18 }
  0x9c   :  { %v1429_v40 = vld [vmem:[%s2340_s26] sm:$0xff]  ;;  %v1430_v41 = vld [vmem:[%s2340_s26 + $0x8] sm:$0xff] }
  0x9d   :  { %2004 = vmatprep.mubr.msk.f32.mxu1 %vm55_vm0, %v1429_v40  ;;  %1518 = vst.msk [vmem:[#allocation2 + $0x4] sm:$0xff] %vm55_vm0, %v1516_v36  ;;  %1519 = vst.msk [vmem:[#allocation2 + $0xc] sm:$0xff] %vm55_vm0, %v1517_v37 }
  0x9e   :  { %1525 = vst.msk [vmem:[#allocation2] sm:$0xf] %vm63_vm1, %v1833_v38  ;;  %1531 = vst.msk [vmem:[#allocation2 + $0x14] sm:$0xf] %vm63_vm1, %v1834_v39  ;;  %2005 = vmatmul.mubr.msk.f32.vlgmr.msra.gmra.mxu1 %vm55_vm0, %v1430_v41 }
  0x9f   :  { %2015 = vmatpush3.msk.msra.mxu1 %vm2262_vm8, %v2089_v18 }
  0xa0   :  { %2016 = vmatprep.subr.msk.mxu1 %vm2303_vm9, %v2089_v18 }
  0xa1   :  { %2017 = vmatpush3.msk.msra.mxu1 %vm2303_vm9, %v2089_v18 }
  0xa5   :  { %v1532_v46 = vld [vmem:[%s2340_s26] sm:$0xff]  ;;  %v1533_v47 = vld [vmem:[%s2340_s26 + $0x8] sm:$0xff] }
  0xa6   :  { %2011 = vmatprep.mubr.msk.f32.mxu0 %vm55_vm0, %v1532_v46  ;;  %1621 = vst.msk [vmem:[#allocation2 + $0x4] sm:$0xff] %vm55_vm0, %v1619_v42  ;;  %1622 = vst.msk [vmem:[#allocation2 + $0xc] sm:$0xff] %vm55_vm0, %v1620_v43 }
  0xa7   :  { %1628 = vst.msk [vmem:[#allocation2] sm:$0xf] %vm63_vm1, %v1839_v44  ;;  %1634 = vst.msk [vmem:[#allocation2 + $0x14] sm:$0xf] %vm63_vm1, %v1840_v45  ;;  %2012 = vmatmul.mubr.msk.f32.vlgmr.msra.gmra.mxu0 %vm55_vm0, %v1533_v47 }
  0xae   :  { %v1635_v48 = vld [vmem:[%s2340_s26] sm:$0xff]  ;;  %v1636_v18 = vld [vmem:[%s2340_s26 + $0x8] sm:$0xff] }
  0xaf   :  { %2018 = vmatprep.mubr.msk.f32.mxu1 %vm55_vm0, %v1635_v48 }
  0xb0   :  { %2019 = vmatmul.mubr.msk.f32.vlgmr.msra.gmra.mxu1 %vm55_vm0, %v1636_v18 }
  0xf0   :  { %v1915_v49 = vpop.f32.mrf.mxu0 }
  0xf1   :  { %156 = vst.msk [vmem:[#allocation8 + $0x8] sm:$0xff] %vm55_vm0, %v1915_v49 }
  0xf2   :  { %v146_v50 = vpop.f32.mrf.mxu0 }
  0xf3   :  { %155 = vst.msk [vmem:[#allocation8] sm:$0xff] %vm55_vm0, %v146_v50  ;;  %v1922_v51 = vpop.f32.mrf.mxu1 }
  0xf4   :  { %259 = vst.msk [vmem:[#allocation8 + $0x18] sm:$0xff] %vm55_vm0, %v1922_v51 }
  0xf5   :  { %v248_v52 = vpop.f32.mrf.mxu1 }
  0xf6   :  { %258 = vst.msk [vmem:[#allocation8 + $0x10] sm:$0xff] %vm55_vm0, %v248_v52 }
  0xfb   :  { %v1929_v53 = vpop.f32.mrf.mxu0 }
  0xfc   :  { %362 = vst.msk [vmem:[#allocation8 + $0x28] sm:$0xff] %vm55_vm0, %v1929_v53 }
  0xfd   :  { %v351_v54 = vpop.f32.mrf.mxu0 }
  0xfe   :  { %361 = vst.msk [vmem:[#allocation8 + $0x20] sm:$0xff] %vm55_vm0, %v351_v54 }
 0x104   :  { %v1936_v55 = vpop.f32.mrf.mxu1 }
 0x105   :  { %465 = vst.msk [vmem:[#allocation8 + $0x38] sm:$0xff] %vm55_vm0, %v1936_v55 }
 0x106   :  { %v454_v56 = vpop.f32.mrf.mxu1 }
 0x107   :  { %464 = vst.msk [vmem:[#allocation8 + $0x30] sm:$0xff] %vm55_vm0, %v454_v56 }
 0x10d   :  { %v1943_v57 = vpop.f32.mrf.mxu0 }
 0x10e   :  { %568 = vst.msk [vmem:[#allocation8 + $0x48] sm:$0xff] %vm55_vm0, %v1943_v57 }
 0x10f   :  { %v557_v58 = vpop.f32.mrf.mxu0 }
 0x110   :  { %567 = vst.msk [vmem:[#allocation8 + $0x40] sm:$0xff] %vm55_vm0, %v557_v58 }
 0x116   :  { %v1950_v59 = vpop.f32.mrf.mxu1 }
 0x117   :  { %671 = vst.msk [vmem:[#allocation8 + $0x58] sm:$0xff] %vm55_vm0, %v1950_v59 }
 0x118   :  { %v660_v60 = vpop.f32.mrf.mxu1 }
 0x119   :  { %670 = vst.msk [vmem:[#allocation8 + $0x50] sm:$0xff] %vm55_vm0, %v660_v60 }
 0x11f   :  { %v1957_v61 = vpop.f32.mrf.mxu0 }
 0x120   :  { %774 = vst.msk [vmem:[#allocation8 + $0x68] sm:$0xff] %vm55_vm0, %v1957_v61 }
 0x121   :  { %v763_v62 = vpop.f32.mrf.mxu0 }
 0x122   :  { %773 = vst.msk [vmem:[#allocation8 + $0x60] sm:$0xff] %vm55_vm0, %v763_v62 }
 0x128   :  { %v1964_v63 = vpop.f32.mrf.mxu1 }
 0x129   :  { %877 = vst.msk [vmem:[#allocation8 + $0x78] sm:$0xff] %vm55_vm0, %v1964_v63 }
 0x12a   :  { %v866_v0 = vpop.f32.mrf.mxu1 }
 0x12b   :  { %876 = vst.msk [vmem:[#allocation8 + $0x70] sm:$0xff] %vm55_vm0, %v866_v0 }
 0x131   :  { %v1971_v1 = vpop.f32.mrf.mxu0 }
 0x132   :  { %999 = vst.msk [vmem:[#allocation8 + $0x88] sm:$0xff] %vm55_vm0, %v1971_v1 }
 0x133   :  { %v988_v2 = vpop.f32.mrf.mxu0 }
 0x134   :  { %998 = vst.msk [vmem:[#allocation8 + $0x80] sm:$0xff] %vm55_vm0, %v988_v2 }
 0x13a   :  { %v1978_v3 = vpop.f32.mrf.mxu1 }
 0x13b   :  { %1102 = vst.msk [vmem:[#allocation8 + $0x98] sm:$0xff] %vm55_vm0, %v1978_v3 }
 0x13c   :  { %v1091_v4 = vpop.f32.mrf.mxu1 }
 0x13d   :  { %1101 = vst.msk [vmem:[#allocation8 + $0x90] sm:$0xff] %vm55_vm0, %v1091_v4 }
 0x143   :  { %v1985_v5 = vpop.f32.mrf.mxu0 }
 0x144   :  { %1205 = vst.msk [vmem:[#allocation8 + $0xa8] sm:$0xff] %vm55_vm0, %v1985_v5 }
 0x145   :  { %v1194_v6 = vpop.f32.mrf.mxu0 }
 0x146   :  { %1204 = vst.msk [vmem:[#allocation8 + $0xa0] sm:$0xff] %vm55_vm0, %v1194_v6 }
 0x14c   :  { %v1992_v7 = vpop.f32.mrf.mxu1 }
 0x14d   :  { %1308 = vst.msk [vmem:[#allocation8 + $0xb8] sm:$0xff] %vm55_vm0, %v1992_v7 }
 0x14e   :  { %v1297_v8 = vpop.f32.mrf.mxu1 }
 0x14f   :  { %1307 = vst.msk [vmem:[#allocation8 + $0xb0] sm:$0xff] %vm55_vm0, %v1297_v8 }
 0x155   :  { %v1999_v9 = vpop.f32.mrf.mxu0 }
 0x156   :  { %1411 = vst.msk [vmem:[#allocation8 + $0xc8] sm:$0xff] %vm55_vm0, %v1999_v9 }
 0x157   :  { %v1400_v10 = vpop.f32.mrf.mxu0 }
 0x158   :  { %1410 = vst.msk [vmem:[#allocation8 + $0xc0] sm:$0xff] %vm55_vm0, %v1400_v10 }
 0x15e   :  { %v2006_v11 = vpop.f32.mrf.mxu1 }
 0x15f   :  { %1514 = vst.msk [vmem:[#allocation8 + $0xd8] sm:$0xff] %vm55_vm0, %v2006_v11 }
 0x160   :  { %v1503_v12 = vpop.f32.mrf.mxu1 }
 0x161   :  { %1513 = vst.msk [vmem:[#allocation8 + $0xd0] sm:$0xff] %vm55_vm0, %v1503_v12 }
 0x167   :  { %v2013_v13 = vpop.f32.mrf.mxu0 }
 0x168   :  { %1617 = vst.msk [vmem:[#allocation8 + $0xe8] sm:$0xff] %vm55_vm0, %v2013_v13 }
 0x169   :  { %v1606_v14 = vpop.f32.mrf.mxu0 }
 0x16a   :  { %1616 = vst.msk [vmem:[#allocation8 + $0xe0] sm:$0xff] %vm55_vm0, %v1606_v14 }
 0x170   :  { %v2020_v15 = vpop.f32.mrf.mxu1 }
 0x171   :  { %1720 = vst.msk [vmem:[#allocation8 + $0xf8] sm:$0xff] %vm55_vm0, %v2020_v15 }
 0x172   :  { %v1709_v16 = vpop.f32.mrf.mxu1 }
 0x173   :  { %1719 = vst.msk [vmem:[#allocation8 + $0xf0] sm:$0xff] %vm55_vm0, %v1709_v16 }
 0x174   :  { %2070 = shalt.err (!%p2067_p0)
}
 0x175   :  { %1732 = dma.vmem_to_hbm [thread:$0]  %s1727_s28, 4096, %s2508_s2, [#allocation7], %s2087_s0, %s2087_s0, %s2088_s17  }
 0x176   :  { %2083 = dma.done.wait [#allocation7], 4096  }
 0x177   :  { %2084 = vsyncadd [#allocation7], 4294963200 }
 0x178   :  { %1736 = vsyncpa [#allocation6], 1 }
 0x179   :  { %1737 = vsyncpa [#allocation7], 1 }

</bundles_post_ra>
